<compile_context>
chip_gen: v7x
topology: tpu7x:2x2x1
jax: 0.10.0
libtpu: 0.0.40
codegen_flags: <defaults>
</compile_context>

<pallas_src>
import jax
import jax.numpy as jnp
from jax.experimental import pallas as pl
from jax.experimental.pallas import tpu as pltpu


def _round_up(x, m):
    return (x + m - 1) // m * m


def ffn_kernel(x_ref, w1_ref, b1_ref, w2_ref, b2_ref, o_ref):
    # In-kernel cast of the streamed x tile to the MXU compute dtype (bf16);
    # avoids a separate wrapper-side HBM cast pass over the activations.
    x = x_ref[...].astype(w1_ref.dtype)
    # Linear 1 (MXU, f32 accumulation) then fused bias + ReLU + downcast so the
    # (TM, 4C) intermediate is held in the compute dtype, not f32.
    h = jnp.dot(x, w1_ref[...], preferred_element_type=jnp.float32)
    h = jnp.maximum(h + b1_ref[...], 0.0).astype(w2_ref.dtype)
    # Linear 2 (MXU, f32 accumulation) + bias.
    o = jnp.dot(h, w2_ref[...], preferred_element_type=jnp.float32) + b2_ref[...]
    # Dropout is identity in eval mode.
    o_ref[...] = o.astype(o_ref.dtype)


def prepare_ffn_params(w1, b1, w2, b2, compute_dtype=jnp.bfloat16):
    """One-time parameter preparation (hoisted out of the per-call path).

    Casts weights to the MXU compute dtype and biases to f32 (2-D for clean
    broadcasting inside the kernel).
    """
    return (w1.astype(compute_dtype),
            b1.astype(jnp.float32).reshape(1, -1),
            w2.astype(compute_dtype),
            b2.astype(jnp.float32).reshape(1, -1))


def feedforward(x, params, *, block_m=1024, out_dtype=None,
                weight_buffering=1, stream_buffering=None):
    """x: (B, T, C) in f32 or bf16. params: output of prepare_ffn_params().

    Returns (B, T, C) in `out_dtype` (default: x.dtype).  Dropout is eval-mode.
    """
    w1c, b1_2, w2c, b2_2 = params
    B, T, C = x.shape
    H = w1c.shape[1]
    M = B * T
    out_dtype = x.dtype if out_dtype is None else out_dtype

    # Token tile: multiple of 8 sublanes.  Choose an even number of grid steps
    # (>= 2) so the two TensorCores on v7x get balanced work; ~neutral on
    # single-TC v5e/v6e.  block_m caps the tile so per-step overhead is
    # amortized while staying well inside VMEM.
    m8 = _round_up(M, 8)
    num_steps = 2 * pl.cdiv(m8, 2 * block_m)          # even, >= 2
    TM = _round_up(pl.cdiv(m8, num_steps), 8)
    grid_m = pl.cdiv(M, TM)

    itx = jnp.dtype(x.dtype).itemsize
    ito = jnp.dtype(out_dtype).itemsize
    itc = jnp.dtype(w1c.dtype).itemsize

    # Per-generation VMEM budget: actual footprint (double-buffered x/out tiles,
    # conservatively double-buffered resident params, f32 accumulator + compute-
    # dtype hidden), capped at ~78% of this chip's per-TC VMEM capacity.
    needed = (2 * TM * C * itx                       # streamed x tiles
              + 2 * TM * C * ito                     # streamed out tiles
              + 2 * (C * H + H * C) * itc            # resident W1/W2 (worst case)
              + 2 * (H + C) * 4                      # resident biases (f32)
              + TM * H * (4 + itc))                  # f32 acc + hidden in compute dtype
    try:
        vmem_cap = int(pltpu.get_tpu_info().vmem_capacity_bytes)
    except Exception:
        vmem_cap = 64 << 20                          # conservative (v7x per-TC)
    vmem_limit = int(min(max(int(1.25 * needed) + (1 << 20), 16 << 20),
                         int(0.78 * vmem_cap)))

    # Advisory cost for XLA's scheduler.
    flops = 4 * M * C * H                            # two matmuls, 2 flops/MAC
    bytes_accessed = (M * C * itx + (C * H + H * C) * itc
                      + (H + C) * 4 + M * C * ito)
    cost = pl.CostEstimate(flops=flops, transcendentals=0,
                           bytes_accessed=bytes_accessed)

    def build(wbuf, sbuf):
        def const_spec(shape):
            if wbuf is None:
                return pl.BlockSpec(shape, lambda i: (0, 0))
            return pl.BlockSpec(shape, lambda i: (0, 0),
                                pipeline_mode=pl.Buffered(wbuf))

        def stream_spec(shape):
            if sbuf is None:
                return pl.BlockSpec(shape, lambda i: (i, 0))
            return pl.BlockSpec(shape, lambda i: (i, 0),
                                pipeline_mode=pl.Buffered(sbuf))

        return pl.pallas_call(
            ffn_kernel,
            out_shape=jax.ShapeDtypeStruct((M, C), out_dtype),
            grid_spec=pl.GridSpec(
                grid=(grid_m,),
                in_specs=[
                    stream_spec((TM, C)),    # x tile streams through VMEM
                    const_spec((C, H)),      # W1 resident
                    const_spec((1, H)),      # b1 resident
                    const_spec((H, C)),      # W2 resident
                    const_spec((1, C)),      # b2 resident
                ],
                out_specs=stream_spec((TM, C)),
            ),
            compiler_params=pltpu.CompilerParams(
                dimension_semantics=("parallel",),
                vmem_limit_bytes=vmem_limit),
            cost_estimate=cost,
        )

    x2 = x.reshape(M, C)   # metadata-only reshape; no cast/pad of activations
    try:
        out = build(weight_buffering, stream_buffering)(x2, w1c, b1_2, w2c, b2_2)
    except Exception:
        # Fallback if this jax build rejects single-buffered BlockSpecs.
        out = build(None, None)(x2, w1c, b1_2, w2c, b2_2)

    return out.reshape(B, T, C)


def _init_params(key, n_embd):
    """Deterministic init mimicking PyTorch nn.Linear (uniform +/- 1/sqrt(fan_in))."""
    h = 4 * n_embd
    k1, k2, k3, k4 = jax.random.split(key, 4)
    lim1 = 1.0 / jnp.sqrt(jnp.float32(n_embd))
    lim2 = 1.0 / jnp.sqrt(jnp.float32(h))
    w1 = jax.random.uniform(k1, (n_embd, h), jnp.float32, -lim1, lim1)
    b1 = jax.random.uniform(k2, (h,), jnp.float32, -lim1, lim1)
    w2 = jax.random.uniform(k3, (h, n_embd), jnp.float32, -lim2, lim2)
    b2 = jax.random.uniform(k4, (n_embd,), jnp.float32, -lim2, lim2)
    return w1, b1, w2, b2


if __name__ == "__main__":
    n_embd = 192
    B, T = 2, 8

    key = jax.random.PRNGKey(0)
    kx, kp = jax.random.split(key)
    x = jax.random.normal(kx, (B, T, n_embd), jnp.float32)
    w1, b1, w2, b2 = _init_params(kp, n_embd)

    # One-time parameter prep (hoisted out of the per-call path).
    params = prepare_ffn_params(w1, b1, w2, b2)

    out = feedforward(x, params)
    out = jax.block_until_ready(out)
    assert out.shape == (B, T, n_embd)
    assert out.dtype == x.dtype

    # Reference with the same bf16 operands / f32 accumulation (dropout in
    # eval mode == identity).
    xb = x.reshape(-1, n_embd).astype(jnp.bfloat16)
    w1b = w1.astype(jnp.bfloat16)
    w2b = w2.astype(jnp.bfloat16)
    h = jnp.maximum(
        jnp.dot(xb, w1b, preferred_element_type=jnp.float32) + b1, 0.0)
    ref = jnp.dot(h.astype(jnp.bfloat16), w2b,
                  preferred_element_type=jnp.float32) + b2
    ref = ref.reshape(B, T, n_embd)
    assert jnp.allclose(out, ref, atol=2e-2, rtol=2e-2)

    # Loose sanity check against pure-f32 math as well.
    ref_f32 = (jnp.maximum(x.reshape(-1, n_embd) @ w1 + b1, 0.0) @ w2
               + b2).reshape(B, T, n_embd)
    assert jnp.allclose(out, ref_f32, atol=5e-2, rtol=5e-2)

    print("KERNEL_OK")
</pallas_src>

<mosaic_0001>
module attributes {stable_mosaic.version = 11 : i64} {
  func.func @ffn_kernel(%arg0: i32, %arg1: memref<8x192xf32, #tpu.memory_space<vmem>>, %arg2: memref<192x768xbf16, #tpu.memory_space<vmem>>, %arg3: memref<1x768xf32, #tpu.memory_space<vmem>>, %arg4: memref<768x192xbf16, #tpu.memory_space<vmem>>, %arg5: memref<1x192xf32, #tpu.memory_space<vmem>>, %arg6: memref<8x192xf32, #tpu.memory_space<vmem>>) attributes {dimension_semantics = [#tpu.dimension_semantics<parallel>], iteration_bounds = array<i64: 2>, scalar_prefetch = 0 : i64, scratch_operands = 0 : i64, tpu.core_type = #tpu.core_type<tc>, window_params = [{transform_indices = @transform_0, window_bounds = array<i64: 8, 192>}, {pipeline_mode = #tpu.pipeline_mode<synchronous>, transform_indices = @transform_1, window_bounds = array<i64: 192, 768>}, {pipeline_mode = #tpu.pipeline_mode<synchronous>, transform_indices = @transform_2, window_bounds = array<i64: 1, 768>}, {pipeline_mode = #tpu.pipeline_mode<synchronous>, transform_indices = @transform_3, window_bounds = array<i64: 768, 192>}, {pipeline_mode = #tpu.pipeline_mode<synchronous>, transform_indices = @transform_4, window_bounds = array<i64: 1, 192>}, {transform_indices = @transform_5, window_bounds = array<i64: 8, 192>}]} {
    %c0 = arith.constant 0 : index
    %c0_0 = arith.constant 0 : index
    %0 = vector.load %arg1[%c0, %c0_0] : memref<8x192xf32, #tpu.memory_space<vmem>>, vector<8x192xf32>
    %1 = arith.truncf %0 : vector<8x192xf32> to vector<8x192xbf16>
    %c0_1 = arith.constant 0 : index
    %c0_2 = arith.constant 0 : index
    %2 = vector.load %arg2[%c0_1, %c0_2] : memref<192x768xbf16, #tpu.memory_space<vmem>>, vector<192x768xbf16>
    %cst = arith.constant dense<0.000000e+00> : vector<8x768xf32>
    %3 = tpu.matmul %1, %2, %cst {dimension_numbers = #tpu.dot_dimension_numbers<[1], [0], [0], [1], [0, 0, 1, 1], [], []>} : vector<8x192xbf16>, vector<192x768xbf16>, vector<8x768xf32> -> vector<8x768xf32>
    %c0_3 = arith.constant 0 : index
    %c0_4 = arith.constant 0 : index
    %4 = vector.load %arg3[%c0_3, %c0_4] : memref<1x768xf32, #tpu.memory_space<vmem>>, vector<1x768xf32>
    %5 = vector.broadcast %4 : vector<1x768xf32> to vector<8x768xf32>
    %6 = arith.addf %3, %5 : vector<8x768xf32>
    %cst_5 = arith.constant 0.000000e+00 : f32
    %7 = vector.broadcast %cst_5 : f32 to vector<8x768xf32>
    %8 = arith.maximumf %6, %7 : vector<8x768xf32>
    %9 = arith.truncf %8 : vector<8x768xf32> to vector<8x768xbf16>
    %c0_6 = arith.constant 0 : index
    %c0_7 = arith.constant 0 : index
    %10 = vector.load %arg4[%c0_6, %c0_7] : memref<768x192xbf16, #tpu.memory_space<vmem>>, vector<768x192xbf16>
    %cst_8 = arith.constant dense<0.000000e+00> : vector<8x192xf32>
    %11 = tpu.matmul %9, %10, %cst_8 {dimension_numbers = #tpu.dot_dimension_numbers<[1], [0], [0], [1], [0, 0, 1, 1], [], []>} : vector<8x768xbf16>, vector<768x192xbf16>, vector<8x192xf32> -> vector<8x192xf32>
    %c0_9 = arith.constant 0 : index
    %c0_10 = arith.constant 0 : index
    %12 = vector.load %arg5[%c0_9, %c0_10] : memref<1x192xf32, #tpu.memory_space<vmem>>, vector<1x192xf32>
    %13 = vector.broadcast %12 : vector<1x192xf32> to vector<8x192xf32>
    %14 = arith.addf %11, %13 : vector<8x192xf32>
    %c0_11 = arith.constant 0 : index
    %c0_12 = arith.constant 0 : index
    %15 = vector.load %arg6[%c0_11, %c0_12] : memref<8x192xf32, #tpu.memory_space<vmem>>, vector<8x192xf32>
    tpu.vector_store %arg6[%c0_11, %c0_12], %14 {strides = array<i32>} : memref<8x192xf32, #tpu.memory_space<vmem>>, vector<8x192xf32>,
    return
  }
  func.func @transform_0(%arg0: i32) -> (i32, i32) {
    %c0_i32 = arith.constant 0 : i32
    %c0_i32_0 = arith.constant 0 : i32
    return %arg0, %c0_i32 : i32, i32
  }
  func.func @transform_1(%arg0: i32) -> (i32, i32) {
    %c0_i32 = arith.constant 0 : i32
    %c0_i32_0 = arith.constant 0 : i32
    %c0_i32_1 = arith.constant 0 : i32
    return %c0_i32, %c0_i32_0 : i32, i32
  }
  func.func @transform_2(%arg0: i32) -> (i32, i32) {
    %c0_i32 = arith.constant 0 : i32
    %c0_i32_0 = arith.constant 0 : i32
    %c0_i32_1 = arith.constant 0 : i32
    return %c0_i32, %c0_i32_0 : i32, i32
  }
  func.func @transform_3(%arg0: i32) -> (i32, i32) {
    %c0_i32 = arith.constant 0 : i32
    %c0_i32_0 = arith.constant 0 : i32
    %c0_i32_1 = arith.constant 0 : i32
    return %c0_i32, %c0_i32_0 : i32, i32
  }
  func.func @transform_4(%arg0: i32) -> (i32, i32) {
    %c0_i32 = arith.constant 0 : i32
    %c0_i32_0 = arith.constant 0 : i32
    %c0_i32_1 = arith.constant 0 : i32
    return %c0_i32, %c0_i32_0 : i32, i32
  }
  func.func @transform_5(%arg0: i32) -> (i32, i32) {
    %c0_i32 = arith.constant 0 : i32
    %c0_i32_0 = arith.constant 0 : i32
    return %arg0, %c0_i32 : i32, i32
  }
}

module attributes {stable_mosaic.version = 11 : i64} {
  func.func @ffn_kernel(%arg0: i32, %arg1: memref<8x192xf32, #tpu.memory_space<vmem>>, %arg2: memref<192x768xbf16, #tpu.memory_space<vmem>>, %arg3: memref<1x768xf32, #tpu.memory_space<vmem>>, %arg4: memref<768x192xbf16, #tpu.memory_space<vmem>>, %arg5: memref<1x192xf32, #tpu.memory_space<vmem>>, %arg6: memref<8x192xf32, #tpu.memory_space<vmem>>) attributes {dimension_semantics = [#tpu.dimension_semantics<parallel>], iteration_bounds = array<i64: 2>, scalar_prefetch = 0 : i64, scratch_operands = 0 : i64, tpu.core_type = #tpu.core_type<tc>, window_params = [{transform_indices = @transform_0, window_bounds = array<i64: 8, 192>}, {pipeline_mode = #tpu.pipeline_mode<synchronous>, transform_indices = @transform_1, window_bounds = array<i64: 192, 768>}, {pipeline_mode = #tpu.pipeline_mode<synchronous>, transform_indices = @transform_2, window_bounds = array<i64: 1, 768>}, {pipeline_mode = #tpu.pipeline_mode<synchronous>, transform_indices = @transform_3, window_bounds = array<i64: 768, 192>}, {pipeline_mode = #tpu.pipeline_mode<synchronous>, transform_indices = @transform_4, window_bounds = array<i64: 1, 192>}, {transform_indices = @transform_5, window_bounds = array<i64: 8, 192>}]} {
    %c0 = arith.constant 0 : index
    %c0_0 = arith.constant 0 : index
    %0 = vector.load %arg1[%c0, %c0_0] : memref<8x192xf32, #tpu.memory_space<vmem>>, vector<8x192xf32>
    %1 = arith.truncf %0 : vector<8x192xf32> to vector<8x192xbf16>
    %c0_1 = arith.constant 0 : index
    %c0_2 = arith.constant 0 : index
    %2 = vector.load %arg2[%c0_1, %c0_2] : memref<192x768xbf16, #tpu.memory_space<vmem>>, vector<192x768xbf16>
    %cst = arith.constant dense<0.000000e+00> : vector<8x768xf32>
    %3 = tpu.matmul %1, %2, %cst {dimension_numbers = #tpu.dot_dimension_numbers<[1], [0], [0], [1], [0, 0, 1, 1], [], []>} : vector<8x192xbf16>, vector<192x768xbf16>, vector<8x768xf32> -> vector<8x768xf32>
    %c0_3 = arith.constant 0 : index
    %c0_4 = arith.constant 0 : index
    %4 = vector.load %arg3[%c0_3, %c0_4] : memref<1x768xf32, #tpu.memory_space<vmem>>, vector<1x768xf32>
    %5 = vector.broadcast %4 : vector<1x768xf32> to vector<8x768xf32>
    %6 = arith.addf %3, %5 : vector<8x768xf32>
    %cst_5 = arith.constant 0.000000e+00 : f32
    %7 = vector.broadcast %cst_5 : f32 to vector<8x768xf32>
    %8 = arith.maximumf %6, %7 : vector<8x768xf32>
    %9 = arith.truncf %8 : vector<8x768xf32> to vector<8x768xbf16>
    %c0_6 = arith.constant 0 : index
    %c0_7 = arith.constant 0 : index
    %10 = vector.load %arg4[%c0_6, %c0_7] : memref<768x192xbf16, #tpu.memory_space<vmem>>, vector<768x192xbf16>
    %cst_8 = arith.constant dense<0.000000e+00> : vector<8x192xf32>
    %11 = tpu.matmul %9, %10, %cst_8 {dimension_numbers = #tpu.dot_dimension_numbers<[1], [0], [0], [1], [0, 0, 1, 1], [], []>} : vector<8x768xbf16>, vector<768x192xbf16>, vector<8x192xf32> -> vector<8x192xf32>
    %c0_9 = arith.constant 0 : index
    %c0_10 = arith.constant 0 : index
    %12 = vector.load %arg5[%c0_9, %c0_10] : memref<1x192xf32, #tpu.memory_space<vmem>>, vector<1x192xf32>
    %13 = vector.broadcast %12 : vector<1x192xf32> to vector<8x192xf32>
    %14 = arith.addf %11, %13 : vector<8x192xf32>
    %c0_11 = arith.constant 0 : index
    %c0_12 = arith.constant 0 : index
    %15 = vector.load %arg6[%c0_11, %c0_12] : memref<8x192xf32, #tpu.memory_space<vmem>>, vector<8x192xf32>
    tpu.vector_store %arg6[%c0_11, %c0_12], %14 {strides = array<i32>} : memref<8x192xf32, #tpu.memory_space<vmem>>, vector<8x192xf32>,
    return
  }
  func.func @transform_0(%arg0: i32) -> (i32, i32) {
    %c0_i32 = arith.constant 0 : i32
    %c0_i32_0 = arith.constant 0 : i32
    return %arg0, %c0_i32 : i32, i32
  }
  func.func @transform_1(%arg0: i32) -> (i32, i32) {
    %c0_i32 = arith.constant 0 : i32
    %c0_i32_0 = arith.constant 0 : i32
    %c0_i32_1 = arith.constant 0 : i32
    return %c0_i32, %c0_i32_0 : i32, i32
  }
  func.func @transform_2(%arg0: i32) -> (i32, i32) {
    %c0_i32 = arith.constant 0 : i32
    %c0_i32_0 = arith.constant 0 : i32
    %c0_i32_1 = arith.constant 0 : i32
    return %c0_i32, %c0_i32_0 : i32, i32
  }
  func.func @transform_3(%arg0: i32) -> (i32, i32) {
    %c0_i32 = arith.constant 0 : i32
    %c0_i32_0 = arith.constant 0 : i32
    %c0_i32_1 = arith.constant 0 : i32
    return %c0_i32, %c0_i32_0 : i32, i32
  }
  func.func @transform_4(%arg0: i32) -> (i32, i32) {
    %c0_i32 = arith.constant 0 : i32
    %c0_i32_0 = arith.constant 0 : i32
    %c0_i32_1 = arith.constant 0 : i32
    return %c0_i32, %c0_i32_0 : i32, i32
  }
  func.func @transform_5(%arg0: i32) -> (i32, i32) {
    %c0_i32 = arith.constant 0 : i32
    %c0_i32_0 = arith.constant 0 : i32
    return %arg0, %c0_i32 : i32, i32
  }
}

</mosaic_0001>

<bundles_post_ra>
// kernel: tpu_custom_call.1
= control target key start
LH: loop header
LB: loop body
LE: loop exit
PB: predicated region body
PF: predicated region fallthrough
CT: control target
= control target key end

     0   :  { %10 = vsyncpa [#allocation3], 0  ;;  %s2844_s0 = inlined_call_operand.vmem [shape: f32[16,192], index: 0, kind: input, shape index: {}]   ;;  %s2845_s1 = inlined_call_operand.vmem [shape: bf16[192,768], index: 1, kind: input, shape index: {}]   ;;  %s2846_s2 = inlined_call_operand.vmem [shape: f32[1,768], index: 2, kind: input, shape index: {}]   ;;  %s2847_s3 = inlined_call_operand.vmem [shape: bf16[768,192], index: 3, kind: input, shape index: {}]   ;;  %s2848_s4 = inlined_call_operand.vmem [shape: f32[1,192], index: 4, kind: input, shape index: {}]   ;;  %s2849_s5 = inlined_call_operand.hbm [shape: f32[16,192], index: 5, kind: output, shape index: {}]  }
   0x1   :  { %12 = vsyncpa [#allocation3 + $0x1], 0  ;;  %s2197_s18 = smov 0   ;;  %s2199_s19 = smov 0  }
   0x2   :  { %s2201_s20 = smov 0   ;;  %s2203_s21 = smov 0  }
   0x3 LB: > { %s2218_s22 = sadd.s32 4294967295, %s2164_s21   ;;  %s1618_s23 = sadd.s32 4294967294, %s2164_s21   ;;  %s2164_s21 = sphi %s2203_s21, %s2855_s21   ;;  %s2160_s20 = sphi %s2201_s20, %s2854_s20   ;;  %s2156_s19 = sphi %s2199_s19, %s2853_s19   ;;  %s2152_s18 = sphi %s2197_s18, %s2852_s18  }
   0x4   : > { %s2222_s24 = sadd.s32 1, %s2164_s21   ;;  %s135_s25 = sadd.s32 1, %s2160_s20 }
   0x5   : > { %s132_s26 = ssub.s32 %s2164_s21, %s2222_s24  ;;  %p145_p0 = scmp.ne.s32.totalorder %s2160_s20, %s2156_s19 }
   0x6   : > { %p133_p1 = scmp.eq.s32.totalorder %s132_s26, 0  ;;  %p146_p2 = scmp.eq.s32.totalorder %s2218_s22, 1 }
   0x7   : > { %p151_p3 = scmp.ne.s32.totalorder %s2156_s19, %s2152_s18  ;;  %p152_p4 = scmp.eq.s32.totalorder %s1618_s23, 1 }
   0x8   : > { %s2233_s27 = scalar_select %p133_p1, %s2160_s20, %s135_s25  }
   0x9   : > { %p2235_p5 = por %p146_p2, %p145_p0  ;;  %p2239_p6 = por %p152_p4, %p151_p3 }
   0xa   : > { %p1621_p7 = scmp.ge.s32.totalorder %s2164_s21, 1  ;;  %p190_p8 = scmp.lt.s32.totalorder %s2164_s21, 3 }
   0xc   : > { %p191_p9 = pnand %p1621_p7, %p190_p8 }
   0xd   : > { %v1850_v0 = vld [vmem:[%s2845_s1 + $0xc] ss:$24 sps:$4 sm:$0xff] (!%p191_p9)   ;;  %v1852_v1 = vld [vmem:[%s2845_s1 + $0x8] ss:$24 sps:$4 sm:$0xff] (!%p191_p9)   ;;  %v1853_v2 = vld [vmem:[%s2845_s1 + $0x3c] ss:$24 sps:$4 sm:$0xff] (!%p191_p9)  }
   0xe   : > { %194 = sbr.rel (%p191_p9) target bundleno = 575 (0x23f), region = 40  ;;  %737 = vmatprep.subr.bf16.mxu1 (!%p191_p9), %v1850_v0  ;;  %v1855_v3 = vld [vmem:[%s2845_s1 + $0x38] ss:$24 sps:$4 sm:$0xff] (!%p191_p9)   ;;  %v1856_v4 = vld [vmem:[%s2845_s1 + $0x6c] ss:$24 sps:$4 sm:$0xff] (!%p191_p9)   ;;  %p218_p10 = scmp.lt.s32.totalorder (!%p191_p9), %s2218_s22, 1 }
   0xf   : > { %738 = vmatpush1.bf16.msra.mxu1 (!%p191_p9), %v1852_v1  ;;  %v1859_v5 = vld [vmem:[%s2845_s1 + $0x4] ss:$24 sps:$4 sm:$0xff] (!%p191_p9)   ;;  %v1861_v6 = vld [vmem:[%s2845_s1] ss:$24 sps:$4 sm:$0xff] (!%p191_p9)   ;;  %v1865_v8 = vld [vmem:[%s2845_s1 + $0x34] ss:$24 sps:$4 sm:$0xff] (!%p191_p9)  }
  0x10   : > { %739 = vmatprep.subr.bf16.mxu1 (!%p191_p9), %v1853_v2  ;;  %v1858_v7 = vld [vmem:[%s2845_s1 + $0x68] ss:$24 sps:$4 sm:$0xff] (!%p191_p9)   ;;  %696 = vmatprep.subr.bf16.mxu0 (!%p191_p9), %v1859_v5  ;;  %v1862_v10 = vld [vmem:[%s2845_s1 + $0x9c] ss:$24 sps:$4 sm:$0xff] (!%p191_p9)   ;;  %v1864_v11 = vld [vmem:[%s2845_s1 + $0x98] ss:$24 sps:$4 sm:$0xff] (!%p191_p9)  }
  0x11   : > { %697 = vmatpush1.bf16.msra.mxu0 (!%p191_p9), %v1861_v6  ;;  %v1867_v9 = vld [vmem:[%s2845_s1 + $0x30] ss:$24 sps:$4 sm:$0xff] (!%p191_p9)   ;;  %v1871_v12 = vld [vmem:[%s2845_s1 + $0x64] ss:$24 sps:$4 sm:$0xff] (!%p191_p9)   ;;  %v1873_v14 = vld [vmem:[%s2845_s1 + $0x60] ss:$24 sps:$4 sm:$0xff] (!%p191_p9)  }
  0x12   : > { %698 = vmatprep.subr.bf16.mxu0 (!%p191_p9), %v1865_v8  ;;  %v1868_v13 = vld [vmem:[%s2845_s1 + $0xcc] ss:$24 sps:$4 sm:$0xff] (!%p191_p9)   ;;  %v1870_v16 = vld [vmem:[%s2845_s1 + $0xc8] ss:$24 sps:$4 sm:$0xff] (!%p191_p9)   ;;  %v1874_v17 = vld [vmem:[%s2845_s1 + $0xfc] ss:$24 sps:$4 sm:$0xff] (!%p191_p9)  }
  0x13   : > { %740 = vmatpush1.bf16.msra.mxu1 (!%p191_p9), %v1855_v3  ;;  %v1877_v15 = vld [vmem:[%s2845_s1 + $0x94] ss:$24 sps:$4 sm:$0xff] (!%p191_p9)   ;;  %v1879_v18 = vld [vmem:[%s2845_s1 + $0x90] ss:$24 sps:$4 sm:$0xff] (!%p191_p9)   ;;  %v1883_v19 = vld [vmem:[%s2845_s1 + $0xc4] ss:$24 sps:$4 sm:$0xff] (!%p191_p9)  }
  0x14   : > { %741 = vmatprep.subr.bf16.mxu1 (!%p191_p9), %v1856_v4  ;;  %v1876_v20 = vld [vmem:[%s2845_s1 + $0xf8] ss:$24 sps:$4 sm:$0xff] (!%p191_p9)   ;;  %v1880_v21 = vld [vmem:[%s2845_s1 + $0x12c] ss:$24 sps:$4 sm:$0xff] (!%p191_p9)   ;;  %v1882_v24 = vld [vmem:[%s2845_s1 + $0x128] ss:$24 sps:$4 sm:$0xff] (!%p191_p9)  }
  0x15   : > { %699 = vmatpush1.bf16.msra.mxu0 %v1867_v9  ;;  %v1885_v22 = vld [vmem:[%s2845_s1 + $0xc0] ss:$24 sps:$4 sm:$0xff]   ;;  %s219_s25 = scalar_select %p218_p10, %s2218_s22, 1  ;;  %v1889_v23 = vld [vmem:[%s2845_s1 + $0xf4] ss:$24 sps:$4 sm:$0xff]   ;;  %vm692_vm0 = vcmask 523264  }
  0x16   : > { %700 = vmatprep.subr.bf16.mxu0 %v1871_v12  ;;  %v1886_v25 = vld [vmem:[%s2845_s1 + $0x15c] ss:$24 sps:$4 sm:$0xff]   ;;  %v1891_v26 = vld [vmem:[%s2845_s1 + $0xf0] ss:$24 sps:$4 sm:$0xff]   ;;  %v1892_v29 = vld [vmem:[%s2845_s1 + $0x18c] ss:$24 sps:$4 sm:$0xff]  }
  0x17   : > { %742 = vmatpush1.bf16.msra.mxu1 %v1858_v7  ;;  %s1801_s12 = sshll.u32 %s219_s25, 4  ;;  %v1895_v27 = vld [vmem:[%s2845_s1 + $0x124] ss:$24 sps:$4 sm:$0xff]   ;;  %v1888_v28 = vld [vmem:[%s2845_s1 + $0x158] ss:$24 sps:$4 sm:$0xff]   ;;  %s215_s15 = sand.u32 1, %s2156_s19  }
  0x18   : > { %743 = vmatprep.subr.bf16.mxu1 %v1862_v10  ;;  %s2337_s26 = scalar_lea.vmem %s2844_s0, %s1801_s12  ;;  %v1897_v30 = vld [vmem:[%s2845_s1 + $0x120] ss:$24 sps:$4 sm:$0xff]   ;;  %v1901_v31 = vld [vmem:[%s2845_s1 + $0x154] ss:$24 sps:$4 sm:$0xff]   ;;  %v1903_v35 = vld [vmem:[%s2845_s1 + $0x150] ss:$24 sps:$4 sm:$0xff]  }
  0x19   : > { %701 = vmatpush1.bf16.msra.mxu0 %v1873_v14  ;;  %v225_v32 = vld [vmem:[%s2337_s26 + $0x8] sm:$0xff]  ;;  %v1898_v36 = vld [vmem:[%s2845_s1 + $0x1bc] ss:$24 sps:$4 sm:$0xff]   ;;  %v1900_v38 = vld [vmem:[%s2845_s1 + $0x1b8] ss:$24 sps:$4 sm:$0xff]   ;;  %s1622_s16 = sshll.u32 %s215_s15, 4 }
  0x1a   : > { %702 = vmatprep.subr.bf16.mxu0 %v1877_v15  ;;  %v1894_v33 = vld [vmem:[%s2845_s1 + $0x188] ss:$24 sps:$4 sm:$0xff]   ;;  %v227_v34 = vpack.c.bf16 %v225_v32, %v225_v32  ;;  %v1907_v37 = vld [vmem:[%s2845_s1 + $0x184] ss:$24 sps:$4 sm:$0xff]   ;;  %v1913_v41 = vld [vmem:[%s2845_s1 + $0x1b4] ss:$24 sps:$4 sm:$0xff]  }
  0x1b   : > { %744 = vmatpush1.bf16.msra.mxu1 %v1864_v11  ;;  %v1909_v39 = vld [vmem:[%s2845_s1 + $0x180] ss:$24 sps:$4 sm:$0xff]   ;;  %v1904_v40 = vld [vmem:[%s2845_s1 + $0x1ec] ss:$24 sps:$4 sm:$0xff]   ;;  %v1915_v43 = vld [vmem:[%s2845_s1 + $0x1b0] ss:$24 sps:$4 sm:$0xff]  }
  0x1c   : > { %745 = vmatprep.subr.bf16.mxu1 %v1868_v13  ;;  %1698 = vmatprep.mubr.msk.bf16.mxu1 %vm692_vm0, %v227_v34  ;;  %v1906_v42 = vld [vmem:[%s2845_s1 + $0x1e8] ss:$24 sps:$4 sm:$0xff]   ;;  %v1910_v44 = vld [vmem:[%s2845_s1 + $0x21c] ss:$24 sps:$4 sm:$0xff]   ;;  %v1912_v46 = vld [vmem:[%s2845_s1 + $0x218] ss:$24 sps:$4 sm:$0xff]  }
  0x1d   : > { %703 = vmatpush1.bf16.msra.mxu0 %v1879_v18  ;;  %1697 = vmatprep.mubr.msk.bf16.mxu0 %vm692_vm0, %v227_v34  ;;  %v1916_v45 = vld [vmem:[%s2845_s1 + $0x1e4] ss:$24 sps:$4 sm:$0xff]   ;;  %v1918_v48 = vld [vmem:[%s2845_s1 + $0x1e0] ss:$24 sps:$4 sm:$0xff]   ;;  %v1919_v49 = vld [vmem:[%s2845_s1 + $0x214] ss:$24 sps:$4 sm:$0xff]  }
  0x1e   : > { %704 = vmatprep.subr.bf16.mxu0 %v1883_v19  ;;  %v224_v47 = vld [vmem:[%s2337_s26] sm:$0xff]  ;;  %v1921_v51 = vld [vmem:[%s2845_s1 + $0x210] ss:$24 sps:$4 sm:$0xff]   ;;  %v1924_v52 = vld [vmem:[%s2845_s1 + $0x14] ss:$24 sps:$4 sm:$0xff]   ;;  %s1802_s17 = sshll.u32 %s2218_s22, 8 }
  0x1f   : > { %746 = vmatpush1.bf16.msra.mxu1 %v1870_v16  ;;  %v2397_v50 = vpack.c.bf16 %v224_v47, %v224_v47  ;;  %v1958_v53 = vld [vmem:[%s2847_s3 + $0x100] ss:$8 sps:$4 sm:$0xff]   ;;  %v1960_v54 = vld [vmem:[%s2847_s3 + $0x104] ss:$8 sps:$4 sm:$0xff]   ;;  %v1963_v56 = vld [vmem:[%s2847_s3 + $0x114] ss:$8 sps:$4 sm:$0xff]   ;;  %s2801_s7 = scalar_lea.hbm %s2849_s5, %s1802_s17 }
  0x20   : > { %747 = vmatprep.subr.bf16.mxu1 %v1874_v17  ;;  %v1922_v55 = vld [vmem:[%s2845_s1 + $0x10] ss:$24 sps:$4 sm:$0xff]   ;;  %v1927_v57 = vld [vmem:[%s2845_s1 + $0x44] ss:$24 sps:$4 sm:$0xff]   ;;  %v1925_v60 = vld [vmem:[%s2845_s1 + $0x40] ss:$24 sps:$4 sm:$0xff]  }
  0x21   : > { %705 = vmatpush1.bf16.msra.mxu0 %v1885_v22  ;;  %v1961_v58 = vld [vmem:[%s2847_s3 + $0x110] ss:$8 sps:$4 sm:$0xff]   ;;  %v1966_v59 = vld [vmem:[%s2847_s3 + $0x124] ss:$8 sps:$4 sm:$0xff]   ;;  %v1964_v62 = vld [vmem:[%s2847_s3 + $0x120] ss:$8 sps:$4 sm:$0xff]  }
  0x22   : > { %706 = vmatprep.subr.bf16.mxu0 %v1889_v23  ;;  %v1930_v61 = vld [vmem:[%s2845_s1 + $0x74] ss:$24 sps:$4 sm:$0xff]   ;;  %v1928_v0 = vld [vmem:[%s2845_s1 + $0x70] ss:$24 sps:$4 sm:$0xff]   ;;  %v1933_v1 = vld [vmem:[%s2845_s1 + $0xa4] ss:$24 sps:$4 sm:$0xff]  }
  0x23   : > { %748 = vmatpush1.bf16.msra.mxu1 %v1876_v20  ;;  %v1972_v63 = vld [vmem:[%s2847_s3 + $0x134] ss:$8 sps:$4 sm:$0xff]   ;;  %v1970_v2 = vld [vmem:[%s2847_s3 + $0x130] ss:$8 sps:$4 sm:$0xff]   ;;  %v1978_v3 = vld [vmem:[%s2847_s3 + $0x144] ss:$8 sps:$4 sm:$0xff]  }
  0x24   : > { %749 = vmatprep.subr.bf16.mxu1 %v1880_v21  ;;  %v1931_v4 = vld [vmem:[%s2845_s1 + $0xa0] ss:$24 sps:$4 sm:$0xff]   ;;  %v1936_v5 = vld [vmem:[%s2845_s1 + $0xd4] ss:$24 sps:$4 sm:$0xff]   ;;  %v1934_v8 = vld [vmem:[%s2845_s1 + $0xd0] ss:$24 sps:$4 sm:$0xff]  }
  0x25   : > { %707 = vmatpush1.bf16.msra.mxu0 %v1891_v26  ;;  %v1976_v6 = vld [vmem:[%s2847_s3 + $0x140] ss:$8 sps:$4 sm:$0xff]   ;;  %v1984_v7 = vld [vmem:[%s2847_s3 + $0x154] ss:$8 sps:$4 sm:$0xff]   ;;  %v1982_v10 = vld [vmem:[%s2847_s3 + $0x150] ss:$8 sps:$4 sm:$0xff]  }
  0x26   : > { %708 = vmatprep.subr.bf16.mxu0 %v1895_v27  ;;  %v1939_v9 = vld [vmem:[%s2845_s1 + $0x104] ss:$24 sps:$4 sm:$0xff]   ;;  %v1937_v12 = vld [vmem:[%s2845_s1 + $0x100] ss:$24 sps:$4 sm:$0xff]   ;;  %v1942_v13 = vld [vmem:[%s2845_s1 + $0x134] ss:$24 sps:$4 sm:$0xff]  }
  0x27   : > { %750 = vmatpush1.bf16.msra.mxu1 %v1882_v24  ;;  %v1990_v11 = vld [vmem:[%s2847_s3 + $0x164] ss:$8 sps:$4 sm:$0xff]   ;;  %v1988_v14 = vld [vmem:[%s2847_s3 + $0x160] ss:$8 sps:$4 sm:$0xff]   ;;  %v1996_v15 = vld [vmem:[%s2847_s3 + $0x174] ss:$8 sps:$4 sm:$0xff]  }
  0x28   : > { %751 = vmatprep.subr.bf16.mxu1 %v1886_v25  ;;  %v1940_v16 = vld [vmem:[%s2845_s1 + $0x130] ss:$24 sps:$4 sm:$0xff]   ;;  %v1945_v17 = vld [vmem:[%s2845_s1 + $0x164] ss:$24 sps:$4 sm:$0xff]   ;;  %v1943_v20 = vld [vmem:[%s2845_s1 + $0x160] ss:$24 sps:$4 sm:$0xff]  }
  0x29   : > { %709 = vmatpush1.bf16.msra.mxu0 %v1897_v30  ;;  %v1994_v18 = vld [vmem:[%s2847_s3 + $0x170] ss:$8 sps:$4 sm:$0xff]   ;;  %v2002_v19 = vld [vmem:[%s2847_s3 + $0x184] ss:$8 sps:$4 sm:$0xff]   ;;  %v2000_v22 = vld [vmem:[%s2847_s3 + $0x180] ss:$8 sps:$4 sm:$0xff]  }
  0x2a   : > { %710 = vmatprep.subr.bf16.mxu0 %v1901_v31  ;;  %v1948_v21 = vld [vmem:[%s2845_s1 + $0x194] ss:$24 sps:$4 sm:$0xff]   ;;  %v1946_v23 = vld [vmem:[%s2845_s1 + $0x190] ss:$24 sps:$4 sm:$0xff]   ;;  %v1951_v25 = vld [vmem:[%s2845_s1 + $0x1c4] ss:$24 sps:$4 sm:$0xff]  }
  0x2b   : > { %752 = vmatpush1.bf16.msra.mxu1 %v1888_v28  ;;  %v2008_v24 = vld [vmem:[%s2847_s3 + $0x194] ss:$8 sps:$4 sm:$0xff]   ;;  %v2006_v26 = vld [vmem:[%s2847_s3 + $0x190] ss:$8 sps:$4 sm:$0xff]   ;;  %v2014_v27 = vld [vmem:[%s2847_s3 + $0x1a4] ss:$8 sps:$4 sm:$0xff]  }
  0x2c   : > { %753 = vmatprep.subr.bf16.mxu1 %v1892_v29  ;;  %v1949_v28 = vld [vmem:[%s2845_s1 + $0x1c0] ss:$24 sps:$4 sm:$0xff]   ;;  %v1954_v29 = vld [vmem:[%s2845_s1 + $0x1f4] ss:$24 sps:$4 sm:$0xff]   ;;  %v1952_v32 = vld [vmem:[%s2845_s1 + $0x1f0] ss:$24 sps:$4 sm:$0xff]  }
  0x2d   : > { %711 = vmatpush1.bf16.msra.mxu0 %v1903_v35  ;;  %v2012_v30 = vld [vmem:[%s2847_s3 + $0x1a0] ss:$8 sps:$4 sm:$0xff]   ;;  %v2020_v31 = vld [vmem:[%s2847_s3 + $0x1b4] ss:$8 sps:$4 sm:$0xff]   ;;  %v2026_v35 = vld [vmem:[%s2847_s3 + $0x1c4] ss:$8 sps:$4 sm:$0xff]  }
  0x2e   : > { %712 = vmatprep.subr.bf16.mxu0 %v1907_v37  ;;  %v1969_v37 = vld [vmem:[%s2847_s3 + $0x4] ss:$8 sps:$4 sm:$0xff]   ;;  %v1985_v47 = vld [vmem:[%s2847_s3 + $0x30] ss:$8 sps:$4 sm:$0xff]   ;;  %s217_s23 = scalar_lea.vmem [#allocation2], %s1622_s16  ;;  %s1545_s22 = scalar_lea.sflag [#allocation3], %s215_s15 }
  0x2f   : > { %754 = vmatpush1.bf16.msra.mxu1 %v1894_v33  ;;  %v1957_v33 = vld [vmem:[%s2845_s1 + $0x224] ss:$24 sps:$4 sm:$0xff]   ;;  %s1559_s30 = sshll.u32 %s217_s23, 4  ;;  %s2166_s9 = smov [#allocation2]   ;;  %s2803_s30 = int_to_ptr.vmem [resolvable:$true] %s1559_s30 }
  0x30   : > { %755 = vmatprep.subr.bf16.mxu1 %v1898_v36  ;;  %v1955_v36 = vld [vmem:[%s2845_s1 + $0x220] ss:$24 sps:$4 sm:$0xff]   ;;  %s2102_s8 = scalar_lea.vmem %s2803_s30, 256  ;;  %s2106_s10 = sshll.u32 %s2166_s9, 4  ;;  %s2107_s10 = int_to_ptr.vmem [resolvable:$false] %s2106_s10 }
  0x31   : > { %713 = vmatpush1.bf16.msra.mxu0 %v1909_v39  ;;  %v2032_v39 = vld [vmem:[%s2847_s3 + $0x1d4] ss:$8 sps:$4 sm:$0xff]   ;;  %p2103_p11 = scmp.ne.s32.totalorder %s2803_s30, %s2102_s8  ;;  %s2108_s11 = scalar_lea.vmem %s2107_s10, 512 }
  0x32   : > { %714 = vmatprep.subr.bf16.mxu0 %v1913_v41  ;;  %v1975_v41 = vld [vmem:[%s2847_s3 + $0x14] ss:$8 sps:$4 sm:$0xff]   ;;  %p2109_p0 = scmp.lt.s32.totalorder %s2803_s30, %s2107_s10  ;;  %p2110_p1 = scmp.lt.s32.totalorder %s2108_s11, %s2102_s8 }
  0x33   : > { %756 = vmatpush1.bf16.msra.mxu1 %v1900_v38  ;;  %v2024_v38 = vld [vmem:[%s2847_s3 + $0x1c0] ss:$8 sps:$4 sm:$0xff]   ;;  %p2104_p12 = pnand %p2103_p11, %p2235_p5 }
  0x34   : > { %757 = vmatprep.subr.bf16.mxu1 %v1904_v40  ;;  %v1967_v40 = vld [vmem:[%s2847_s3] ss:$8 sps:$4 sm:$0xff]   ;;  %p2111_p2 = por %p2110_p1, %p2109_p0 }
  0x35   : > { %715 = vmatpush1.bf16.msra.mxu0 %v1915_v43  ;;  %v1973_v43 = vld [vmem:[%s2847_s3 + $0x10] ss:$8 sps:$4 sm:$0xff]   ;;  %p2105_p13 = pneg %p2104_p12 }
  0x36   : > { %716 = vmatprep.subr.bf16.mxu0 %v1916_v45  ;;  %v1979_v45 = vld [vmem:[%s2847_s3 + $0x20] ss:$8 sps:$4 sm:$0xff]  }
  0x37   : > { %758 = vmatpush1.bf16.msra.mxu1 %v1906_v42  ;;  %v2030_v42 = vld [vmem:[%s2847_s3 + $0x1d0] ss:$8 sps:$4 sm:$0xff]   ;;  %p2112_p3 = pnand %p2111_p2, %p2105_p13 }
  0x38   : > { %759 = vmatprep.subr.bf16.mxu1 %v1910_v44  ;;  %v1981_v44 = vld [vmem:[%s2847_s3 + $0x24] ss:$8 sps:$4 sm:$0xff]  }
  0x39   : > { %717 = vmatpush1.bf16.msra.mxu0 %v1918_v48  ;;  %v1993_v48 = vld [vmem:[%s2847_s3 + $0x44] ss:$8 sps:$4 sm:$0xff]  }
  0x3a   : > { %718 = vmatprep.subr.bf16.mxu0 %v1919_v49  ;;  %v1991_v49 = vld [vmem:[%s2847_s3 + $0x40] ss:$8 sps:$4 sm:$0xff]  }
  0x3b   : > { %760 = vmatpush1.bf16.msra.mxu1 %v1912_v46  ;;  %v1987_v46 = vld [vmem:[%s2847_s3 + $0x34] ss:$8 sps:$4 sm:$0xff]  }
  0x3c   : > { %1460 = vmatprep.subr.bf16.mxu1 %v1960_v54  ;;  %v2011_v54 = vld [vmem:[%s2847_s3 + $0x74] ss:$8 sps:$4 sm:$0xff]  }
  0x3d   : > { %719 = vmatpush1.bf16.msra.mxu0 %v1921_v51  ;;  %v1997_v51 = vld [vmem:[%s2847_s3 + $0x50] ss:$8 sps:$4 sm:$0xff]  }
  0x3e   : > { %770 = vmatmul.mubr.bf16.vlgmr.msra.gmra.mrb[0].mxu1 %v2397_v50  ;;  %778 = vmatprep.subr.bf16.mxu0 %v1924_v52  ;;  %v2005_v52 = vld [vmem:[%s2847_s3 + $0x64] ss:$8 sps:$4 sm:$0xff]  }
  0x3f   : > { %1461 = vmatpush1.bf16.msra.mxu1 %v1958_v53  ;;  %v2003_v53 = vld [vmem:[%s2847_s3 + $0x60] ss:$8 sps:$4 sm:$0xff]  }
  0x40   : > { %1462 = vmatprep.subr.bf16.mxu1 %v1963_v56  ;;  %729 = vmatmul.mubr.bf16.vlgmr.msra.gmra.mrb[0].mxu0 %v2397_v50  ;;  %v2017_v56 = vld [vmem:[%s2847_s3 + $0x84] ss:$8 sps:$4 sm:$0xff]  }
  0x41   : > { %779 = vmatpush1.bf16.msra.mxu0 %v1922_v55  ;;  %1699 = vmatprep.mubr.msk.bf16.mxu0 %vm692_vm0, %v227_v34  ;;  %v2018_v34 = vld [vmem:[%s2847_s3 + $0x1b0] ss:$8 sps:$4 sm:$0xff]  }
  0x42   : > { %780 = vmatprep.subr.bf16.mxu0 %v1927_v57  ;;  %v2009_v55 = vld [vmem:[%s2847_s3 + $0x70] ss:$8 sps:$4 sm:$0xff]   ;;  %v2015_v57 = vld [vmem:[%s2847_s3 + $0x80] ss:$8 sps:$4 sm:$0xff]  }
  0x43   : > { %1463 = vmatpush1.bf16.msra.mxu1 %v1961_v58  ;;  %v2038_v58 = vld [vmem:[%s2847_s3 + $0x1e4] ss:$8 sps:$4 sm:$0xff]  }
  0x44   : > { %1464 = vmatprep.subr.bf16.mxu1 %v1966_v59  ;;  %v2023_v59 = vld [vmem:[%s2847_s3 + $0x94] ss:$8 sps:$4 sm:$0xff]  }
  0x45   : > { %781 = vmatpush1.bf16.msra.mxu0 %v1925_v60  ;;  %v2036_v60 = vld [vmem:[%s2847_s3 + $0x1e0] ss:$8 sps:$4 sm:$0xff]  }
  0x46   : > { %782 = vmatprep.subr.bf16.mxu0 %v1930_v61  ;;  %v2021_v61 = vld [vmem:[%s2847_s3 + $0x90] ss:$8 sps:$4 sm:$0xff]  }
  0x47   : > { %1465 = vmatpush1.bf16.msra.mxu1 %v1964_v62  ;;  %v2044_v62 = vld [vmem:[%s2847_s3 + $0x1f4] ss:$8 sps:$4 sm:$0xff]  }
  0x48   : > { %1466 = vmatprep.subr.bf16.mxu1 %v1972_v63  ;;  %v2029_v63 = vld [vmem:[%s2847_s3 + $0xa4] ss:$8 sps:$4 sm:$0xff]  }
  0x49   : > { %783 = vmatpush1.bf16.msra.mxu0 %v1928_v0  ;;  %v2042_v0 = vld [vmem:[%s2847_s3 + $0x1f0] ss:$8 sps:$4 sm:$0xff]  }
  0x4a   : > { %784 = vmatprep.subr.bf16.mxu0 %v1933_v1  ;;  %v2027_v1 = vld [vmem:[%s2847_s3 + $0xa0] ss:$8 sps:$4 sm:$0xff]  }
  0x4b   : > { %1467 = vmatpush1.bf16.msra.mxu1 %v1970_v2  ;;  %v2050_v2 = vld [vmem:[%s2847_s3 + $0x204] ss:$8 sps:$4 sm:$0xff]  }
  0x4c   : > { %1468 = vmatprep.subr.bf16.mxu1 %v1978_v3  ;;  %v2035_v3 = vld [vmem:[%s2847_s3 + $0xb4] ss:$8 sps:$4 sm:$0xff]  }
  0x4d   : > { %785 = vmatpush1.bf16.msra.mxu0 %v1931_v4  ;;  %v2033_v4 = vld [vmem:[%s2847_s3 + $0xb0] ss:$8 sps:$4 sm:$0xff]  }
  0x4e   : > { %786 = vmatprep.subr.bf16.mxu0 %v1936_v5  ;;  %v2041_v5 = vld [vmem:[%s2847_s3 + $0xc4] ss:$8 sps:$4 sm:$0xff]  }
  0x4f   : > { %1469 = vmatpush1.bf16.msra.mxu1 %v1976_v6  ;;  %v2039_v6 = vld [vmem:[%s2847_s3 + $0xc0] ss:$8 sps:$4 sm:$0xff]  }
  0x50   : > { %1470 = vmatprep.subr.bf16.mxu1 %v1984_v7  ;;  %v2047_v7 = vld [vmem:[%s2847_s3 + $0xd4] ss:$8 sps:$4 sm:$0xff]  }
  0x51   : > { %787 = vmatpush1.bf16.msra.mxu0 %v1934_v8  ;;  %v2045_v8 = vld [vmem:[%s2847_s3 + $0xd0] ss:$8 sps:$4 sm:$0xff]  }
  0x52   : > { %788 = vmatprep.subr.bf16.mxu0 %v1939_v9  ;;  %v2053_v9 = vld [vmem:[%s2847_s3 + $0xe4] ss:$8 sps:$4 sm:$0xff]  }
  0x53   : > { %1471 = vmatpush1.bf16.msra.mxu1 %v1982_v10  ;;  %v2051_v10 = vld [vmem:[%s2847_s3 + $0xe0] ss:$8 sps:$4 sm:$0xff]  }
  0x54   : > { %1472 = vmatprep.subr.bf16.mxu1 %v1990_v11  ;;  %v2059_v11 = vld [vmem:[%s2847_s3 + $0xf4] ss:$8 sps:$4 sm:$0xff]  }
  0x55   : > { %789 = vmatpush1.bf16.msra.mxu0 %v1937_v12  ;;  %v2057_v12 = vld [vmem:[%s2847_s3 + $0xf0] ss:$8 sps:$4 sm:$0xff]  }
  0x56   : > { %790 = vmatprep.subr.bf16.mxu0 %v1942_v13  ;;  %v302_v13 = vlaneseq }
  0x57   : > { %1473 = vmatpush1.bf16.msra.mxu1 %v1988_v14 }
  0x58   : > { %1474 = vmatprep.subr.bf16.mxu1 %v1996_v15  ;;  %v2673_v14 = vshrl.u32 %v302_v13, 7 }
  0x59   : > { %791 = vmatpush1.bf16.msra.mxu0 %v1940_v16  ;;  %v2679_v16 = vld [vmem:[%s2846_s2] sm:$0x3f] }
  0x5a   : > { %792 = vmatprep.subr.bf16.mxu0 %v1945_v17  ;;  %v312_v15 = vsub.s32 2, %v2673_v14  ;;  %v316_v17 = vsub.s32 3, %v2673_v14 }
  0x5b   : > { %1475 = vmatpush1.bf16.msra.mxu1 %v1994_v18 }
  0x5c   : > { %1476 = vmatprep.subr.bf16.mxu1 %v2002_v19  ;;  %v313_v18 = vrot.slane %v2679_v16, %v312_v15  ;;  %v304_v19 = vsub.s32 0, %v2673_v14 }
  0x5d   : > { %793 = vmatpush1.bf16.msra.mxu0 %v1943_v20  ;;  %v317_v20 = vrot.slane %v2679_v16, %v316_v17  ;;  %v2093_v17 = vld [vmem:[%s2847_s3 + $0x2d0] ss:$8 sps:$4 sm:$0xff]  }
  0x5e   : > { %794 = vmatprep.subr.bf16.mxu0 %v1948_v21  ;;  %v308_v21 = vsub.s32 1, %v2673_v14 }
  0x5f   : > { %1477 = vmatpush1.bf16.msra.mxu1 %v2000_v22 }
  0x60   : > { %1478 = vmatprep.subr.bf16.mxu1 %v2008_v24 }
  0x61   : > { %795 = vmatpush1.bf16.msra.mxu0 %v1946_v23 }
  0x62   : > { %796 = vmatprep.subr.bf16.mxu0 %v1951_v25  ;;  %v305_v25 = vrot.slane %v2679_v16, %v304_v19 }
  0x63   : > { %1479 = vmatpush1.bf16.msra.mxu1 %v2006_v26 }
  0x64   : > { %1480 = vmatprep.subr.bf16.mxu1 %v2014_v27 }
  0x65   : > { %797 = vmatpush1.bf16.msra.mxu0 %v1949_v28  ;;  %v309_v28 = vrot.slane %v2679_v16, %v308_v21 }
  0x66   : > { %798 = vmatprep.subr.bf16.mxu0 %v1954_v29 }
  0x67   : > { %1481 = vmatpush1.bf16.msra.mxu1 %v2012_v30 }
  0x68   : > { %1482 = vmatprep.subr.bf16.mxu1 %v2020_v31 }
  0x69   : > { %799 = vmatpush1.bf16.msra.mxu0 %v1952_v32 }
  0x6a   : > { %800 = vmatprep.subr.bf16.mxu0 %v1957_v33 }
  0x6b   : > { %1483 = vmatpush1.bf16.msra.mxu1 %v2018_v34 }
  0x6c   : > { %1484 = vmatprep.subr.bf16.mxu1 %v2026_v35 }
  0x6d   : > { %801 = vmatpush1.bf16.msra.mxu0 %v1955_v36  ;;  %v2048_v36 = vld [vmem:[%s2847_s3 + $0x200] ss:$8 sps:$4 sm:$0xff]  }
  0x6e   : > { %1419 = vmatprep.subr.bf16.mxu0 %v1969_v37 }
  0x6f   : > { %1485 = vmatpush1.bf16.msra.mxu1 %v2024_v38 }
  0x70   : > { %1486 = vmatprep.subr.bf16.mxu1 %v2032_v39  ;;  %811 = vmatmul.mubr.bf16.vlgmr.msra.gmra.mrb[4].mxu0 %v2397_v50  ;;  %v1999_v50 = vld [vmem:[%s2847_s3 + $0x54] ss:$8 sps:$4 sm:$0xff]  }
  0x71   : > { %1420 = vmatpush1.bf16.msra.mxu0 %v1967_v40 }
  0x72   : > { %1421 = vmatprep.subr.bf16.mxu0 %v1975_v41  ;;  %v2056_v41 = vld [vmem:[%s2847_s3 + $0x214] ss:$8 sps:$4 sm:$0xff]  }
  0x73   : > { %1487 = vmatpush1.bf16.msra.mxu1 %v2030_v42 }
  0x74   : > { %1488 = vmatprep.subr.bf16.mxu1 %v2038_v58  ;;  %v2075_v58 = vld [vmem:[%s2847_s3 + $0x270] ss:$8 sps:$4 sm:$0xff]  }
  0x75   : > { %1422 = vmatpush1.bf16.msra.mxu0 %v1973_v43 }
  0x76   : > { %1423 = vmatprep.subr.bf16.mxu0 %v1981_v44 }
  0x77   : > { %1489 = vmatpush1.bf16.msra.mxu1 %v2036_v60  ;;  %v2078_v60 = vld [vmem:[%s2847_s3 + $0x280] ss:$8 sps:$4 sm:$0xff]  }
  0x78   : > { %1490 = vmatprep.subr.bf16.mxu1 %v2044_v62  ;;  %v2081_v62 = vld [vmem:[%s2847_s3 + $0x290] ss:$8 sps:$4 sm:$0xff]  }
  0x79   : > { %1424 = vmatpush1.bf16.msra.mxu0 %v1979_v45 }
  0x7a   : > { %1425 = vmatprep.subr.bf16.mxu0 %v1987_v46  ;;  %v2054_v46 = vld [vmem:[%s2847_s3 + $0x210] ss:$8 sps:$4 sm:$0xff]  }
  0x7b   : > { %1491 = vmatpush1.bf16.msra.mxu1 %v2042_v0  ;;  %v2084_v0 = vld [vmem:[%s2847_s3 + $0x2a0] ss:$8 sps:$4 sm:$0xff]  }
  0x7c   : > { %1501 = vmatprep.subr.bf16.mxu1 %v2050_v2  ;;  %v2089_v2 = vld [vmem:[%s2847_s3 + $0x2b4] ss:$8 sps:$4 sm:$0xff]  }
  0x7d   : > { %1426 = vmatpush1.bf16.msra.mxu0 %v1985_v47  ;;  %v2062_v47 = vld [vmem:[%s2847_s3 + $0x224] ss:$8 sps:$4 sm:$0xff]  }
  0x7e   : > { %1427 = vmatprep.subr.bf16.mxu0 %v1993_v48  ;;  %v2060_v48 = vld [vmem:[%s2847_s3 + $0x220] ss:$8 sps:$4 sm:$0xff]  }
  0x81   : > { %1428 = vmatpush1.bf16.msra.mxu0 %v1991_v49  ;;  %v2065_v49 = vld [vmem:[%s2847_s3 + $0x234] ss:$8 sps:$4 sm:$0xff]  }
  0x82   : > { %1429 = vmatprep.subr.bf16.mxu0 %v1999_v50  ;;  %v2063_v50 = vld [vmem:[%s2847_s3 + $0x230] ss:$8 sps:$4 sm:$0xff]  }
  0x85   : > { %1430 = vmatpush1.bf16.msra.mxu0 %v1997_v51  ;;  %v2068_v51 = vld [vmem:[%s2847_s3 + $0x244] ss:$8 sps:$4 sm:$0xff]  }
  0x86   : > { %1431 = vmatprep.subr.bf16.mxu0 %v2005_v52  ;;  %v2066_v52 = vld [vmem:[%s2847_s3 + $0x240] ss:$8 sps:$4 sm:$0xff]  }
  0x89   : > { %1432 = vmatpush1.bf16.msra.mxu0 %v2003_v53  ;;  %v2071_v53 = vld [vmem:[%s2847_s3 + $0x254] ss:$8 sps:$4 sm:$0xff]  }
  0x8a   : > { %1433 = vmatprep.subr.bf16.mxu0 %v2011_v54  ;;  %v2069_v54 = vld [vmem:[%s2847_s3 + $0x250] ss:$8 sps:$4 sm:$0xff]  }
  0x8d   : > { %1434 = vmatpush1.bf16.msra.mxu0 %v2009_v55  ;;  %v2074_v55 = vld [vmem:[%s2847_s3 + $0x264] ss:$8 sps:$4 sm:$0xff]  }
  0x8e   : > { %1435 = vmatprep.subr.bf16.mxu0 %v2017_v56  ;;  %v2072_v56 = vld [vmem:[%s2847_s3 + $0x260] ss:$8 sps:$4 sm:$0xff]  }
  0x91   : > { %1436 = vmatpush1.bf16.msra.mxu0 %v2015_v57  ;;  %v2077_v57 = vld [vmem:[%s2847_s3 + $0x274] ss:$8 sps:$4 sm:$0xff]  }
  0x92   : > { %1437 = vmatprep.subr.bf16.mxu0 %v2023_v59  ;;  %v2080_v59 = vld [vmem:[%s2847_s3 + $0x284] ss:$8 sps:$4 sm:$0xff]  }
  0x95   : > { %1438 = vmatpush1.bf16.msra.mxu0 %v2021_v61  ;;  %v2083_v61 = vld [vmem:[%s2847_s3 + $0x294] ss:$8 sps:$4 sm:$0xff]  }
  0x96   : > { %1439 = vmatprep.subr.bf16.mxu0 %v2029_v63  ;;  %v2086_v63 = vld [vmem:[%s2847_s3 + $0x2a4] ss:$8 sps:$4 sm:$0xff]  }
  0x99   : > { %1440 = vmatpush1.bf16.msra.mxu0 %v2027_v1  ;;  %v324_v1 = vsub.s32 5, %v2673_v14 }
  0x9a   : > { %1441 = vmatprep.subr.bf16.mxu0 %v2035_v3  ;;  %v2087_v3 = vld [vmem:[%s2847_s3 + $0x2b0] ss:$8 sps:$4 sm:$0xff]  }
  0x9d   : > { %1442 = vmatpush1.bf16.msra.mxu0 %v2033_v4  ;;  %v325_v4 = vrot.slane %v2679_v16, %v324_v1 }
  0x9e   : > { %1443 = vmatprep.subr.bf16.mxu0 %v2041_v5  ;;  %v2092_v5 = vld [vmem:[%s2847_s3 + $0x2c4] ss:$8 sps:$4 sm:$0xff]  }
  0xa1   : > { %1444 = vmatpush1.bf16.msra.mxu0 %v2039_v6 }
  0xa2   : > { %1445 = vmatprep.subr.bf16.mxu0 %v2047_v7 }
  0xa5   : > { %1446 = vmatpush1.bf16.msra.mxu0 %v2045_v8  ;;  %v2090_v8 = vld [vmem:[%s2847_s3 + $0x2c0] ss:$8 sps:$4 sm:$0xff]  }
  0xa6   : > { %1447 = vmatprep.subr.bf16.mxu0 %v2053_v9 }
  0xa9   : > { %1448 = vmatpush1.bf16.msra.mxu0 %v2051_v10 }
  0xaa   : > { %1449 = vmatprep.subr.bf16.mxu0 %v2059_v11  ;;  %v320_v11 = vsub.s32 4, %v2673_v14 }
  0xad   : > { %1450 = vmatpush1.bf16.msra.mxu0 %v2057_v12  ;;  %v2095_v12 = vld [vmem:[%s2847_s3 + $0x2d4] ss:$8 sps:$4 sm:$0xff]  }
 0x111   : > { %v771_v22 = vpop.f32.mrb[0].mxu1 }
 0x112   : > { %v772_v23 = vadd.f32 %v771_v22, %v313_v18  ;;  %v773_v24 = vpop.f32.mrb[1].mxu1  ;;  %v2098_v22 = vld [vmem:[%s2847_s3 + $0x2e4] ss:$8 sps:$4 sm:$0xff]  }
 0x113   : > { %v774_v26 = vadd.f32 %v773_v24, %v317_v20  ;;  %v775_v27 = vpop.f32.mrb[2].mxu1  ;;  %v730_v32 = vpop.f32.mrb[0].mxu0  ;;  %v321_v20 = vrot.slane %v2679_v16, %v320_v11  ;;  %v2099_v16 = vld [vmem:[%s2847_s3 + $0x2f0] ss:$8 sps:$4 sm:$0xff]  }
 0x114   : > { %v821_v29 = vmax.f32 %v772_v23, 0.0  ;;  %v776_v30 = vpop.f32.mrb[3].mxu1  ;;  %v731_v33 = vadd.f32 %v730_v32, %v305_v25  ;;  %v732_v34 = vpop.f32.mrb[1].mxu0  ;;  %v2096_v23 = vld [vmem:[%s2847_s3 + $0x2e0] ss:$8 sps:$4 sm:$0xff]  }
 0x115   : > { %v822_v31 = vmax.f32 %v774_v26, 0.0  ;;  %v733_v37 = vadd.f32 %v732_v34, %v309_v28  ;;  %v734_v38 = vpop.f32.mrb[2].mxu0  ;;  %v2101_v25 = vld [vmem:[%s2847_s3 + $0x2f4] ss:$8 sps:$4 sm:$0xff]   ;;  %v927_v28 = vld [vmem:[%s2848_s4] sm:$0x3] }
 0x116   : > { %v827_v39 = vpack.c.bf16 %v821_v29, %v821_v29  ;;  %v819_v40 = vmax.f32 %v731_v33, 0.0  ;;  %v735_v42 = vpop.f32.mrb[3].mxu0  ;;  %v932_v29 = vrot.slane %v927_v28, %v304_v19 }
 0x117   : > { %v828_v35 = vpack.c.bf16 %v822_v31, %v822_v31  ;;  %v820_v43 = vmax.f32 %v733_v37, 0.0 }
 0x118   : > { %v825_v44 = vpack.c.bf16 %v819_v40, %v819_v40 }
 0x119   : > { %1492 = vmatprep.mubr.bf16.mxu1 %v828_v35  ;;  %v826_v45 = vpack.c.bf16 %v820_v43, %v820_v43  ;;  %v936_v35 = vrot.slane %v927_v28, %v308_v21 }
 0x11a   : > { %1493 = vmatmul.mubr.bf16.vlgmr.msra.gmra.mrb[4].mxu1 %v827_v39 }
 0x11b   : > { %1502 = vmatpush1.bf16.msra.mxu1 %v2048_v36  ;;  %1451 = vmatprep.mubr.bf16.mxu0 %v826_v45 }
 0x11c   : > { %1503 = vmatprep.subr.bf16.mxu1 %v2056_v41  ;;  %1452 = vmatmul.mubr.bf16.vlgmr.msra.gmra.mrb[8].mxu0 %v825_v44 }
 0x11f   : > { %1504 = vmatpush1.bf16.msra.mxu1 %v2054_v46 }
 0x120   : > { %1505 = vmatprep.subr.bf16.mxu1 %v2062_v47 }
 0x123   : > { %1506 = vmatpush1.bf16.msra.mxu1 %v2060_v48 }
 0x124   : > { %1507 = vmatprep.subr.bf16.mxu1 %v2065_v49 }
 0x127   : > { %1508 = vmatpush1.bf16.msra.mxu1 %v2063_v50 }
 0x128   : > { %1509 = vmatprep.subr.bf16.mxu1 %v2068_v51 }
 0x12b   : > { %1510 = vmatpush1.bf16.msra.mxu1 %v2066_v52 }
 0x12c   : > { %1511 = vmatprep.subr.bf16.mxu1 %v2071_v53 }
 0x12f   : > { %1512 = vmatpush1.bf16.msra.mxu1 %v2069_v54 }
 0x130   : > { %1513 = vmatprep.subr.bf16.mxu1 %v2074_v55 }
 0x133   : > { %1514 = vmatpush1.bf16.msra.mxu1 %v2072_v56 }
 0x134   : > { %1515 = vmatprep.subr.bf16.mxu1 %v2077_v57 }
 0x137   : > { %1516 = vmatpush1.bf16.msra.mxu1 %v2075_v58 }
 0x138   : > { %1517 = vmatprep.subr.bf16.mxu1 %v2080_v59 }
 0x13b   : > { %1518 = vmatpush1.bf16.msra.mxu1 %v2078_v60 }
 0x13c   : > { %1519 = vmatprep.subr.bf16.mxu1 %v2083_v61 }
 0x13f   : > { %1520 = vmatpush1.bf16.msra.mxu1 %v2081_v62 }
 0x140   : > { %1521 = vmatprep.subr.bf16.mxu1 %v2086_v63 }
 0x143   : > { %1522 = vmatpush1.bf16.msra.mxu1 %v2084_v0  ;;  %v812_v6 = vpop.f32.mrb[4].mxu0 }
 0x144   : > { %1523 = vmatprep.subr.bf16.mxu1 %v2089_v2  ;;  %v814_v7 = vpop.f32.mrb[5].mxu0  ;;  %v813_v24 = vadd.f32 %v812_v6, %v321_v20 }
 0x145   : > { %v815_v9 = vadd.f32 %v814_v7, %v325_v4  ;;  %v816_v10 = vpop.f32.mrb[6].mxu0 }
 0x146   : > { %v817_v13 = vpop.f32.mrb[7].mxu0  ;;  %v823_v26 = vmax.f32 %v813_v24, 0.0 }
 0x147   : > { %1524 = vmatpush1.bf16.msra.mxu1 %v2087_v3  ;;  %v824_v15 = vmax.f32 %v815_v9, 0.0 }
 0x148   : > { %1525 = vmatprep.subr.bf16.mxu1 %v2092_v5  ;;  %v829_v27 = vpack.c.bf16 %v823_v26, %v823_v26 }
 0x149   : > { %v830_v18 = vpack.c.bf16 %v824_v15, %v824_v15 }
 0x14b   : > { %1526 = vmatpush1.bf16.msra.mxu1 %v2090_v8  ;;  %1533 = vmatprep.mubr.bf16.mxu1 %v830_v18 }
 0x14c   : > { %1527 = vmatprep.subr.bf16.mxu1 %v2095_v12 }
 0x14f   : > { %1528 = vmatpush1.bf16.msra.mxu1 %v2093_v17 }
 0x150   : > { %1529 = vmatprep.subr.bf16.mxu1 %v2098_v22 }
 0x153   : > { %1530 = vmatpush1.bf16.msra.mxu1 %v2096_v23 }
 0x154   : > { %1531 = vmatprep.subr.bf16.mxu1 %v2101_v25 }
 0x157   : > { %1532 = vmatpush1.bf16.msra.mxu1 %v2099_v16 }
 0x15a   : > { %1534 = vmatmul.mubr.bf16.vlgmr.msra.gmra.mrb[4].mxu1 %v829_v27 }
 0x1ef   : > { %v1453_v30 = vpop.f32.mrb[8].mxu0 }
 0x1f0   : > { %v1454_v31 = vadd.f32 %v1453_v30, %v932_v29  ;;  %v1455_v32 = vpop.f32.mrb[9].mxu0 }
 0x1f1   : > { %v1457_v33 = vpop.f32.mrb[10].mxu0  ;;  %v1456_v36 = vadd.f32 %v1455_v32, %v936_v35 }
 0x1f2   : > { %v1458_v34 = vpop.f32.mrb[11].mxu0 }
 0x22d   : > { %v1535_v37 = vpop.f32.mrb[4].mxu1 }
 0x22e   : > { %v1804_v38 = vadd.f32 %v1535_v37, %v1454_v31  ;;  %v1537_v39 = vpop.f32.mrb[5].mxu1 }
 0x22f   : > { %v1806_v40 = vadd.f32 %v1537_v39, %v1456_v36  ;;  %v1539_v19 = vpop.f32.mrb[6].mxu1 }
 0x230   : > { %1542 = vst [vmem:[%s217_s23] sm:$0xff] %v1804_v38  ;;  %v1540_v14 = vpop.f32.mrb[7].mxu1 }
 0x231   : > { %1543 = vst.msk [vmem:[%s217_s23 + $0x8] sm:$0xff] %vm692_vm0, %v1806_v40 }
 0x232   : > { %2115 = shalt.err (!%p2112_p3)
}
 0x233   : > { %s2116_s26 = scalar_lea.hbm %s2801_s7, 256  ;;  %s2120_s14 = scalar_lea.hbm %s2849_s5, 512 }
 0x234   : > { %p2117_p4 = scmp.ne.s32.totalorder %s2801_s7, %s2116_s26  ;;  %p2121_p9 = scmp.lt.u32.totalorder %s2801_s7, %s2849_s5 }
 0x235   : > { %p2122_p10 = scmp.lt.u32.totalorder %s2120_s14, %s2116_s26  ;;  %p2124_p12 = scmp.lt.u32.totalorder %s2116_s26, %s2801_s7 }
 0x236   : > { %p2118_p7 = pnand %p2117_p4, %p2235_p5 }
 0x237   : > { %p2123_p11 = por %p2122_p10, %p2121_p9 }
 0x238   : > { %p2119_p8 = pneg %p2118_p7 }
 0x239   : > { %p2125_p13 = por %p2124_p12, %p2123_p11 }
 0x23b   : > { %p2126_p0 = pnand %p2125_p13, %p2119_p8 }
 0x23d   : > { %2129 = shalt.err (!%p2126_p0)
}
 0x23e   : > { %1811 = dma.vmem_to_hbm [thread:$0]  (%p2235_p5), %s2803_s30, 256, %s2801_s7, %s1545_s22  }
 0x23f PF: > { %p1817_p1 = scmp.ge.s32.totalorder %s2164_s21, 2  ;;  %s1571_s17 = sand.u32 1, %s2152_s18  }
 0x240   : > { %s1572_s23 = scalar_lea.sflag [#allocation3], %s1571_s17 }
 0x241   : > { %p1814_p2 = pnand %p1817_p1, %p2239_p6 }
 0x243   : > { %2147 = dma.done.wait (!%p1814_p2), %s1572_s23, 256  }
 0x244   : > { %2149 = vsyncadd (!%p1814_p2), %s1572_s23, 4294967040  ;;  %p15_p3 = scmp.ge.s32.totalorder %s2222_s24, 4   ;;  %s2852_s18 = smov %s2156_s19 }
 0x245   : > { %s2853_s19 = smov %s2160_s20  ;;  %s2854_s20 = smov %s2233_s27 }
 0x246   : > { %s2855_s21 = smov %s2222_s24  ;;  %17 = sbr.rel (!%p15_p3) target bundleno = 3 (0x3), region = 75 }
 0x24d   :  { %1577 = vsyncpa [#allocation3], 1 }
 0x24e   :  { %1579 = vsyncpa [#allocation3 + $0x1], 1 }

// kernel: tpu_custom_call.1
= control target key start
LH: loop header
LB: loop body
LE: loop exit
PB: predicated region body
PF: predicated region fallthrough
CT: control target
= control target key end

     0   :  { %10 = vsyncpa [#allocation3], 0  ;;  %s2844_s0 = inlined_call_operand.vmem [shape: f32[16,192], index: 0, kind: input, shape index: {}]   ;;  %s2845_s1 = inlined_call_operand.vmem [shape: bf16[192,768], index: 1, kind: input, shape index: {}]   ;;  %s2846_s2 = inlined_call_operand.vmem [shape: f32[1,768], index: 2, kind: input, shape index: {}]   ;;  %s2847_s3 = inlined_call_operand.vmem [shape: bf16[768,192], index: 3, kind: input, shape index: {}]   ;;  %s2848_s4 = inlined_call_operand.vmem [shape: f32[1,192], index: 4, kind: input, shape index: {}]   ;;  %s2849_s5 = inlined_call_operand.hbm [shape: f32[16,192], index: 5, kind: output, shape index: {}]  }
   0x1   :  { %12 = vsyncpa [#allocation3 + $0x1], 0  ;;  %s2197_s18 = smov 0   ;;  %s2199_s19 = smov 0  }
   0x2   :  { %s2201_s20 = smov 0   ;;  %s2203_s21 = smov 0  }
   0x3 LB: > { %s2218_s22 = sadd.s32 4294967295, %s2164_s21   ;;  %s1618_s23 = sadd.s32 4294967294, %s2164_s21   ;;  %s2164_s21 = sphi %s2203_s21, %s2855_s21   ;;  %s2160_s20 = sphi %s2201_s20, %s2854_s20   ;;  %s2156_s19 = sphi %s2199_s19, %s2853_s19   ;;  %s2152_s18 = sphi %s2197_s18, %s2852_s18  }
   0x4   : > { %s2222_s24 = sadd.s32 1, %s2164_s21   ;;  %s135_s25 = sadd.s32 1, %s2160_s20 }
   0x5   : > { %s132_s26 = ssub.s32 %s2164_s21, %s2222_s24  ;;  %p145_p0 = scmp.ne.s32.totalorder %s2160_s20, %s2156_s19 }
   0x6   : > { %p133_p1 = scmp.eq.s32.totalorder %s132_s26, 0  ;;  %p146_p2 = scmp.eq.s32.totalorder %s2218_s22, 1 }
   0x7   : > { %p151_p3 = scmp.ne.s32.totalorder %s2156_s19, %s2152_s18  ;;  %p152_p4 = scmp.eq.s32.totalorder %s1618_s23, 1 }
   0x8   : > { %s2233_s27 = scalar_select %p133_p1, %s2160_s20, %s135_s25  }
   0x9   : > { %p2235_p5 = por %p146_p2, %p145_p0  ;;  %p2239_p6 = por %p152_p4, %p151_p3 }
   0xa   : > { %p1621_p7 = scmp.ge.s32.totalorder %s2164_s21, 1  ;;  %p190_p8 = scmp.lt.s32.totalorder %s2164_s21, 3 }
   0xc   : > { %p191_p9 = pnand %p1621_p7, %p190_p8 }
   0xd   : > { %v1850_v0 = vld [vmem:[%s2845_s1 + $0xc] ss:$24 sps:$4 sm:$0xff] (!%p191_p9)   ;;  %v1852_v1 = vld [vmem:[%s2845_s1 + $0x8] ss:$24 sps:$4 sm:$0xff] (!%p191_p9)   ;;  %v1853_v2 = vld [vmem:[%s2845_s1 + $0x3c] ss:$24 sps:$4 sm:$0xff] (!%p191_p9)  }
   0xe   : > { %194 = sbr.rel (%p191_p9) target bundleno = 575 (0x23f), region = 40  ;;  %737 = vmatprep.subr.bf16.mxu1 (!%p191_p9), %v1850_v0  ;;  %v1855_v3 = vld [vmem:[%s2845_s1 + $0x38] ss:$24 sps:$4 sm:$0xff] (!%p191_p9)   ;;  %v1856_v4 = vld [vmem:[%s2845_s1 + $0x6c] ss:$24 sps:$4 sm:$0xff] (!%p191_p9)   ;;  %p218_p10 = scmp.lt.s32.totalorder (!%p191_p9), %s2218_s22, 1 }
   0xf   : > { %738 = vmatpush1.bf16.msra.mxu1 (!%p191_p9), %v1852_v1  ;;  %v1859_v5 = vld [vmem:[%s2845_s1 + $0x4] ss:$24 sps:$4 sm:$0xff] (!%p191_p9)   ;;  %v1861_v6 = vld [vmem:[%s2845_s1] ss:$24 sps:$4 sm:$0xff] (!%p191_p9)   ;;  %v1865_v8 = vld [vmem:[%s2845_s1 + $0x34] ss:$24 sps:$4 sm:$0xff] (!%p191_p9)  }
  0x10   : > { %739 = vmatprep.subr.bf16.mxu1 (!%p191_p9), %v1853_v2  ;;  %v1858_v7 = vld [vmem:[%s2845_s1 + $0x68] ss:$24 sps:$4 sm:$0xff] (!%p191_p9)   ;;  %696 = vmatprep.subr.bf16.mxu0 (!%p191_p9), %v1859_v5  ;;  %v1862_v10 = vld [vmem:[%s2845_s1 + $0x9c] ss:$24 sps:$4 sm:$0xff] (!%p191_p9)   ;;  %v1864_v11 = vld [vmem:[%s2845_s1 + $0x98] ss:$24 sps:$4 sm:$0xff] (!%p191_p9)  }
  0x11   : > { %697 = vmatpush1.bf16.msra.mxu0 (!%p191_p9), %v1861_v6  ;;  %v1867_v9 = vld [vmem:[%s2845_s1 + $0x30] ss:$24 sps:$4 sm:$0xff] (!%p191_p9)   ;;  %v1871_v12 = vld [vmem:[%s2845_s1 + $0x64] ss:$24 sps:$4 sm:$0xff] (!%p191_p9)   ;;  %v1873_v14 = vld [vmem:[%s2845_s1 + $0x60] ss:$24 sps:$4 sm:$0xff] (!%p191_p9)  }
  0x12   : > { %698 = vmatprep.subr.bf16.mxu0 (!%p191_p9), %v1865_v8  ;;  %v1868_v13 = vld [vmem:[%s2845_s1 + $0xcc] ss:$24 sps:$4 sm:$0xff] (!%p191_p9)   ;;  %v1870_v16 = vld [vmem:[%s2845_s1 + $0xc8] ss:$24 sps:$4 sm:$0xff] (!%p191_p9)   ;;  %v1874_v17 = vld [vmem:[%s2845_s1 + $0xfc] ss:$24 sps:$4 sm:$0xff] (!%p191_p9)  }
  0x13   : > { %740 = vmatpush1.bf16.msra.mxu1 (!%p191_p9), %v1855_v3  ;;  %v1877_v15 = vld [vmem:[%s2845_s1 + $0x94] ss:$24 sps:$4 sm:$0xff] (!%p191_p9)   ;;  %v1879_v18 = vld [vmem:[%s2845_s1 + $0x90] ss:$24 sps:$4 sm:$0xff] (!%p191_p9)   ;;  %v1883_v19 = vld [vmem:[%s2845_s1 + $0xc4] ss:$24 sps:$4 sm:$0xff] (!%p191_p9)  }
  0x14   : > { %741 = vmatprep.subr.bf16.mxu1 (!%p191_p9), %v1856_v4  ;;  %v1876_v20 = vld [vmem:[%s2845_s1 + $0xf8] ss:$24 sps:$4 sm:$0xff] (!%p191_p9)   ;;  %v1880_v21 = vld [vmem:[%s2845_s1 + $0x12c] ss:$24 sps:$4 sm:$0xff] (!%p191_p9)   ;;  %v1882_v24 = vld [vmem:[%s2845_s1 + $0x128] ss:$24 sps:$4 sm:$0xff] (!%p191_p9)  }
  0x15   : > { %699 = vmatpush1.bf16.msra.mxu0 %v1867_v9  ;;  %v1885_v22 = vld [vmem:[%s2845_s1 + $0xc0] ss:$24 sps:$4 sm:$0xff]   ;;  %s219_s25 = scalar_select %p218_p10, %s2218_s22, 1  ;;  %v1889_v23 = vld [vmem:[%s2845_s1 + $0xf4] ss:$24 sps:$4 sm:$0xff]   ;;  %vm692_vm0 = vcmask 523264  }
  0x16   : > { %700 = vmatprep.subr.bf16.mxu0 %v1871_v12  ;;  %v1886_v25 = vld [vmem:[%s2845_s1 + $0x15c] ss:$24 sps:$4 sm:$0xff]   ;;  %v1891_v26 = vld [vmem:[%s2845_s1 + $0xf0] ss:$24 sps:$4 sm:$0xff]   ;;  %v1892_v29 = vld [vmem:[%s2845_s1 + $0x18c] ss:$24 sps:$4 sm:$0xff]  }
  0x17   : > { %742 = vmatpush1.bf16.msra.mxu1 %v1858_v7  ;;  %s1801_s12 = sshll.u32 %s219_s25, 4  ;;  %v1895_v27 = vld [vmem:[%s2845_s1 + $0x124] ss:$24 sps:$4 sm:$0xff]   ;;  %v1888_v28 = vld [vmem:[%s2845_s1 + $0x158] ss:$24 sps:$4 sm:$0xff]   ;;  %s215_s15 = sand.u32 1, %s2156_s19  }
  0x18   : > { %743 = vmatprep.subr.bf16.mxu1 %v1862_v10  ;;  %s2337_s26 = scalar_lea.vmem %s2844_s0, %s1801_s12  ;;  %v1897_v30 = vld [vmem:[%s2845_s1 + $0x120] ss:$24 sps:$4 sm:$0xff]   ;;  %v1901_v31 = vld [vmem:[%s2845_s1 + $0x154] ss:$24 sps:$4 sm:$0xff]   ;;  %v1903_v35 = vld [vmem:[%s2845_s1 + $0x150] ss:$24 sps:$4 sm:$0xff]  }
  0x19   : > { %701 = vmatpush1.bf16.msra.mxu0 %v1873_v14  ;;  %v225_v32 = vld [vmem:[%s2337_s26 + $0x8] sm:$0xff]  ;;  %v1898_v36 = vld [vmem:[%s2845_s1 + $0x1bc] ss:$24 sps:$4 sm:$0xff]   ;;  %v1900_v38 = vld [vmem:[%s2845_s1 + $0x1b8] ss:$24 sps:$4 sm:$0xff]   ;;  %s1622_s16 = sshll.u32 %s215_s15, 4 }
  0x1a   : > { %702 = vmatprep.subr.bf16.mxu0 %v1877_v15  ;;  %v1894_v33 = vld [vmem:[%s2845_s1 + $0x188] ss:$24 sps:$4 sm:$0xff]   ;;  %v227_v34 = vpack.c.bf16 %v225_v32, %v225_v32  ;;  %v1907_v37 = vld [vmem:[%s2845_s1 + $0x184] ss:$24 sps:$4 sm:$0xff]   ;;  %v1913_v41 = vld [vmem:[%s2845_s1 + $0x1b4] ss:$24 sps:$4 sm:$0xff]  }
  0x1b   : > { %744 = vmatpush1.bf16.msra.mxu1 %v1864_v11  ;;  %v1909_v39 = vld [vmem:[%s2845_s1 + $0x180] ss:$24 sps:$4 sm:$0xff]   ;;  %v1904_v40 = vld [vmem:[%s2845_s1 + $0x1ec] ss:$24 sps:$4 sm:$0xff]   ;;  %v1915_v43 = vld [vmem:[%s2845_s1 + $0x1b0] ss:$24 sps:$4 sm:$0xff]  }
  0x1c   : > { %745 = vmatprep.subr.bf16.mxu1 %v1868_v13  ;;  %1698 = vmatprep.mubr.msk.bf16.mxu1 %vm692_vm0, %v227_v34  ;;  %v1906_v42 = vld [vmem:[%s2845_s1 + $0x1e8] ss:$24 sps:$4 sm:$0xff]   ;;  %v1910_v44 = vld [vmem:[%s2845_s1 + $0x21c] ss:$24 sps:$4 sm:$0xff]   ;;  %v1912_v46 = vld [vmem:[%s2845_s1 + $0x218] ss:$24 sps:$4 sm:$0xff]  }
  0x1d   : > { %703 = vmatpush1.bf16.msra.mxu0 %v1879_v18  ;;  %1697 = vmatprep.mubr.msk.bf16.mxu0 %vm692_vm0, %v227_v34  ;;  %v1916_v45 = vld [vmem:[%s2845_s1 + $0x1e4] ss:$24 sps:$4 sm:$0xff]   ;;  %v1918_v48 = vld [vmem:[%s2845_s1 + $0x1e0] ss:$24 sps:$4 sm:$0xff]   ;;  %v1919_v49 = vld [vmem:[%s2845_s1 + $0x214] ss:$24 sps:$4 sm:$0xff]  }
  0x1e   : > { %704 = vmatprep.subr.bf16.mxu0 %v1883_v19  ;;  %v224_v47 = vld [vmem:[%s2337_s26] sm:$0xff]  ;;  %v1921_v51 = vld [vmem:[%s2845_s1 + $0x210] ss:$24 sps:$4 sm:$0xff]   ;;  %v1924_v52 = vld [vmem:[%s2845_s1 + $0x14] ss:$24 sps:$4 sm:$0xff]   ;;  %s1802_s17 = sshll.u32 %s2218_s22, 8 }
  0x1f   : > { %746 = vmatpush1.bf16.msra.mxu1 %v1870_v16  ;;  %v2397_v50 = vpack.c.bf16 %v224_v47, %v224_v47  ;;  %v1958_v53 = vld [vmem:[%s2847_s3 + $0x100] ss:$8 sps:$4 sm:$0xff]   ;;  %v1960_v54 = vld [vmem:[%s2847_s3 + $0x104] ss:$8 sps:$4 sm:$0xff]   ;;  %v1963_v56 = vld [vmem:[%s2847_s3 + $0x114] ss:$8 sps:$4 sm:$0xff]   ;;  %s2801_s7 = scalar_lea.hbm %s2849_s5, %s1802_s17 }
  0x20   : > { %747 = vmatprep.subr.bf16.mxu1 %v1874_v17  ;;  %v1922_v55 = vld [vmem:[%s2845_s1 + $0x10] ss:$24 sps:$4 sm:$0xff]   ;;  %v1927_v57 = vld [vmem:[%s2845_s1 + $0x44] ss:$24 sps:$4 sm:$0xff]   ;;  %v1925_v60 = vld [vmem:[%s2845_s1 + $0x40] ss:$24 sps:$4 sm:$0xff]  }
  0x21   : > { %705 = vmatpush1.bf16.msra.mxu0 %v1885_v22  ;;  %v1961_v58 = vld [vmem:[%s2847_s3 + $0x110] ss:$8 sps:$4 sm:$0xff]   ;;  %v1966_v59 = vld [vmem:[%s2847_s3 + $0x124] ss:$8 sps:$4 sm:$0xff]   ;;  %v1964_v62 = vld [vmem:[%s2847_s3 + $0x120] ss:$8 sps:$4 sm:$0xff]  }
  0x22   : > { %706 = vmatprep.subr.bf16.mxu0 %v1889_v23  ;;  %v1930_v61 = vld [vmem:[%s2845_s1 + $0x74] ss:$24 sps:$4 sm:$0xff]   ;;  %v1928_v0 = vld [vmem:[%s2845_s1 + $0x70] ss:$24 sps:$4 sm:$0xff]   ;;  %v1933_v1 = vld [vmem:[%s2845_s1 + $0xa4] ss:$24 sps:$4 sm:$0xff]  }
  0x23   : > { %748 = vmatpush1.bf16.msra.mxu1 %v1876_v20  ;;  %v1972_v63 = vld [vmem:[%s2847_s3 + $0x134] ss:$8 sps:$4 sm:$0xff]   ;;  %v1970_v2 = vld [vmem:[%s2847_s3 + $0x130] ss:$8 sps:$4 sm:$0xff]   ;;  %v1978_v3 = vld [vmem:[%s2847_s3 + $0x144] ss:$8 sps:$4 sm:$0xff]  }
  0x24   : > { %749 = vmatprep.subr.bf16.mxu1 %v1880_v21  ;;  %v1931_v4 = vld [vmem:[%s2845_s1 + $0xa0] ss:$24 sps:$4 sm:$0xff]   ;;  %v1936_v5 = vld [vmem:[%s2845_s1 + $0xd4] ss:$24 sps:$4 sm:$0xff]   ;;  %v1934_v8 = vld [vmem:[%s2845_s1 + $0xd0] ss:$24 sps:$4 sm:$0xff]  }
  0x25   : > { %707 = vmatpush1.bf16.msra.mxu0 %v1891_v26  ;;  %v1976_v6 = vld [vmem:[%s2847_s3 + $0x140] ss:$8 sps:$4 sm:$0xff]   ;;  %v1984_v7 = vld [vmem:[%s2847_s3 + $0x154] ss:$8 sps:$4 sm:$0xff]   ;;  %v1982_v10 = vld [vmem:[%s2847_s3 + $0x150] ss:$8 sps:$4 sm:$0xff]  }
  0x26   : > { %708 = vmatprep.subr.bf16.mxu0 %v1895_v27  ;;  %v1939_v9 = vld [vmem:[%s2845_s1 + $0x104] ss:$24 sps:$4 sm:$0xff]   ;;  %v1937_v12 = vld [vmem:[%s2845_s1 + $0x100] ss:$24 sps:$4 sm:$0xff]   ;;  %v1942_v13 = vld [vmem:[%s2845_s1 + $0x134] ss:$24 sps:$4 sm:$0xff]  }
  0x27   : > { %750 = vmatpush1.bf16.msra.mxu1 %v1882_v24  ;;  %v1990_v11 = vld [vmem:[%s2847_s3 + $0x164] ss:$8 sps:$4 sm:$0xff]   ;;  %v1988_v14 = vld [vmem:[%s2847_s3 + $0x160] ss:$8 sps:$4 sm:$0xff]   ;;  %v1996_v15 = vld [vmem:[%s2847_s3 + $0x174] ss:$8 sps:$4 sm:$0xff]  }
  0x28   : > { %751 = vmatprep.subr.bf16.mxu1 %v1886_v25  ;;  %v1940_v16 = vld [vmem:[%s2845_s1 + $0x130] ss:$24 sps:$4 sm:$0xff]   ;;  %v1945_v17 = vld [vmem:[%s2845_s1 + $0x164] ss:$24 sps:$4 sm:$0xff]   ;;  %v1943_v20 = vld [vmem:[%s2845_s1 + $0x160] ss:$24 sps:$4 sm:$0xff]  }
  0x29   : > { %709 = vmatpush1.bf16.msra.mxu0 %v1897_v30  ;;  %v1994_v18 = vld [vmem:[%s2847_s3 + $0x170] ss:$8 sps:$4 sm:$0xff]   ;;  %v2002_v19 = vld [vmem:[%s2847_s3 + $0x184] ss:$8 sps:$4 sm:$0xff]   ;;  %v2000_v22 = vld [vmem:[%s2847_s3 + $0x180] ss:$8 sps:$4 sm:$0xff]  }
  0x2a   : > { %710 = vmatprep.subr.bf16.mxu0 %v1901_v31  ;;  %v1948_v21 = vld [vmem:[%s2845_s1 + $0x194] ss:$24 sps:$4 sm:$0xff]   ;;  %v1946_v23 = vld [vmem:[%s2845_s1 + $0x190] ss:$24 sps:$4 sm:$0xff]   ;;  %v1951_v25 = vld [vmem:[%s2845_s1 + $0x1c4] ss:$24 sps:$4 sm:$0xff]  }
  0x2b   : > { %752 = vmatpush1.bf16.msra.mxu1 %v1888_v28  ;;  %v2008_v24 = vld [vmem:[%s2847_s3 + $0x194] ss:$8 sps:$4 sm:$0xff]   ;;  %v2006_v26 = vld [vmem:[%s2847_s3 + $0x190] ss:$8 sps:$4 sm:$0xff]   ;;  %v2014_v27 = vld [vmem:[%s2847_s3 + $0x1a4] ss:$8 sps:$4 sm:$0xff]  }
  0x2c   : > { %753 = vmatprep.subr.bf16.mxu1 %v1892_v29  ;;  %v1949_v28 = vld [vmem:[%s2845_s1 + $0x1c0] ss:$24 sps:$4 sm:$0xff]   ;;  %v1954_v29 = vld [vmem:[%s2845_s1 + $0x1f4] ss:$24 sps:$4 sm:$0xff]   ;;  %v1952_v32 = vld [vmem:[%s2845_s1 + $0x1f0] ss:$24 sps:$4 sm:$0xff]  }
  0x2d   : > { %711 = vmatpush1.bf16.msra.mxu0 %v1903_v35  ;;  %v2012_v30 = vld [vmem:[%s2847_s3 + $0x1a0] ss:$8 sps:$4 sm:$0xff]   ;;  %v2020_v31 = vld [vmem:[%s2847_s3 + $0x1b4] ss:$8 sps:$4 sm:$0xff]   ;;  %v2026_v35 = vld [vmem:[%s2847_s3 + $0x1c4] ss:$8 sps:$4 sm:$0xff]  }
  0x2e   : > { %712 = vmatprep.subr.bf16.mxu0 %v1907_v37  ;;  %v1969_v37 = vld [vmem:[%s2847_s3 + $0x4] ss:$8 sps:$4 sm:$0xff]   ;;  %v1985_v47 = vld [vmem:[%s2847_s3 + $0x30] ss:$8 sps:$4 sm:$0xff]   ;;  %s217_s23 = scalar_lea.vmem [#allocation2], %s1622_s16  ;;  %s1545_s22 = scalar_lea.sflag [#allocation3], %s215_s15 }
  0x2f   : > { %754 = vmatpush1.bf16.msra.mxu1 %v1894_v33  ;;  %v1957_v33 = vld [vmem:[%s2845_s1 + $0x224] ss:$24 sps:$4 sm:$0xff]   ;;  %s1559_s30 = sshll.u32 %s217_s23, 4  ;;  %s2166_s9 = smov [#allocation2]   ;;  %s2803_s30 = int_to_ptr.vmem [resolvable:$true] %s1559_s30 }
  0x30   : > { %755 = vmatprep.subr.bf16.mxu1 %v1898_v36  ;;  %v1955_v36 = vld [vmem:[%s2845_s1 + $0x220] ss:$24 sps:$4 sm:$0xff]   ;;  %s2102_s8 = scalar_lea.vmem %s2803_s30, 256  ;;  %s2106_s10 = sshll.u32 %s2166_s9, 4  ;;  %s2107_s10 = int_to_ptr.vmem [resolvable:$false] %s2106_s10 }
  0x31   : > { %713 = vmatpush1.bf16.msra.mxu0 %v1909_v39  ;;  %v2032_v39 = vld [vmem:[%s2847_s3 + $0x1d4] ss:$8 sps:$4 sm:$0xff]   ;;  %p2103_p11 = scmp.ne.s32.totalorder %s2803_s30, %s2102_s8  ;;  %s2108_s11 = scalar_lea.vmem %s2107_s10, 512 }
  0x32   : > { %714 = vmatprep.subr.bf16.mxu0 %v1913_v41  ;;  %v1975_v41 = vld [vmem:[%s2847_s3 + $0x14] ss:$8 sps:$4 sm:$0xff]   ;;  %p2109_p0 = scmp.lt.s32.totalorder %s2803_s30, %s2107_s10  ;;  %p2110_p1 = scmp.lt.s32.totalorder %s2108_s11, %s2102_s8 }
  0x33   : > { %756 = vmatpush1.bf16.msra.mxu1 %v1900_v38  ;;  %v2024_v38 = vld [vmem:[%s2847_s3 + $0x1c0] ss:$8 sps:$4 sm:$0xff]   ;;  %p2104_p12 = pnand %p2103_p11, %p2235_p5 }
  0x34   : > { %757 = vmatprep.subr.bf16.mxu1 %v1904_v40  ;;  %v1967_v40 = vld [vmem:[%s2847_s3] ss:$8 sps:$4 sm:$0xff]   ;;  %p2111_p2 = por %p2110_p1, %p2109_p0 }
  0x35   : > { %715 = vmatpush1.bf16.msra.mxu0 %v1915_v43  ;;  %v1973_v43 = vld [vmem:[%s2847_s3 + $0x10] ss:$8 sps:$4 sm:$0xff]   ;;  %p2105_p13 = pneg %p2104_p12 }
  0x36   : > { %716 = vmatprep.subr.bf16.mxu0 %v1916_v45  ;;  %v1979_v45 = vld [vmem:[%s2847_s3 + $0x20] ss:$8 sps:$4 sm:$0xff]  }
  0x37   : > { %758 = vmatpush1.bf16.msra.mxu1 %v1906_v42  ;;  %v2030_v42 = vld [vmem:[%s2847_s3 + $0x1d0] ss:$8 sps:$4 sm:$0xff]   ;;  %p2112_p3 = pnand %p2111_p2, %p2105_p13 }
  0x38   : > { %759 = vmatprep.subr.bf16.mxu1 %v1910_v44  ;;  %v1981_v44 = vld [vmem:[%s2847_s3 + $0x24] ss:$8 sps:$4 sm:$0xff]  }
  0x39   : > { %717 = vmatpush1.bf16.msra.mxu0 %v1918_v48  ;;  %v1993_v48 = vld [vmem:[%s2847_s3 + $0x44] ss:$8 sps:$4 sm:$0xff]  }
  0x3a   : > { %718 = vmatprep.subr.bf16.mxu0 %v1919_v49  ;;  %v1991_v49 = vld [vmem:[%s2847_s3 + $0x40] ss:$8 sps:$4 sm:$0xff]  }
  0x3b   : > { %760 = vmatpush1.bf16.msra.mxu1 %v1912_v46  ;;  %v1987_v46 = vld [vmem:[%s2847_s3 + $0x34] ss:$8 sps:$4 sm:$0xff]  }
  0x3c   : > { %1460 = vmatprep.subr.bf16.mxu1 %v1960_v54  ;;  %v2011_v54 = vld [vmem:[%s2847_s3 + $0x74] ss:$8 sps:$4 sm:$0xff]  }
  0x3d   : > { %719 = vmatpush1.bf16.msra.mxu0 %v1921_v51  ;;  %v1997_v51 = vld [vmem:[%s2847_s3 + $0x50] ss:$8 sps:$4 sm:$0xff]  }
  0x3e   : > { %770 = vmatmul.mubr.bf16.vlgmr.msra.gmra.mrb[0].mxu1 %v2397_v50  ;;  %778 = vmatprep.subr.bf16.mxu0 %v1924_v52  ;;  %v2005_v52 = vld [vmem:[%s2847_s3 + $0x64] ss:$8 sps:$4 sm:$0xff]  }
  0x3f   : > { %1461 = vmatpush1.bf16.msra.mxu1 %v1958_v53  ;;  %v2003_v53 = vld [vmem:[%s2847_s3 + $0x60] ss:$8 sps:$4 sm:$0xff]  }
  0x40   : > { %1462 = vmatprep.subr.bf16.mxu1 %v1963_v56  ;;  %729 = vmatmul.mubr.bf16.vlgmr.msra.gmra.mrb[0].mxu0 %v2397_v50  ;;  %v2017_v56 = vld [vmem:[%s2847_s3 + $0x84] ss:$8 sps:$4 sm:$0xff]  }
  0x41   : > { %779 = vmatpush1.bf16.msra.mxu0 %v1922_v55  ;;  %1699 = vmatprep.mubr.msk.bf16.mxu0 %vm692_vm0, %v227_v34  ;;  %v2018_v34 = vld [vmem:[%s2847_s3 + $0x1b0] ss:$8 sps:$4 sm:$0xff]  }
  0x42   : > { %780 = vmatprep.subr.bf16.mxu0 %v1927_v57  ;;  %v2009_v55 = vld [vmem:[%s2847_s3 + $0x70] ss:$8 sps:$4 sm:$0xff]   ;;  %v2015_v57 = vld [vmem:[%s2847_s3 + $0x80] ss:$8 sps:$4 sm:$0xff]  }
  0x43   : > { %1463 = vmatpush1.bf16.msra.mxu1 %v1961_v58  ;;  %v2038_v58 = vld [vmem:[%s2847_s3 + $0x1e4] ss:$8 sps:$4 sm:$0xff]  }
  0x44   : > { %1464 = vmatprep.subr.bf16.mxu1 %v1966_v59  ;;  %v2023_v59 = vld [vmem:[%s2847_s3 + $0x94] ss:$8 sps:$4 sm:$0xff]  }
  0x45   : > { %781 = vmatpush1.bf16.msra.mxu0 %v1925_v60  ;;  %v2036_v60 = vld [vmem:[%s2847_s3 + $0x1e0] ss:$8 sps:$4 sm:$0xff]  }
  0x46   : > { %782 = vmatprep.subr.bf16.mxu0 %v1930_v61  ;;  %v2021_v61 = vld [vmem:[%s2847_s3 + $0x90] ss:$8 sps:$4 sm:$0xff]  }
  0x47   : > { %1465 = vmatpush1.bf16.msra.mxu1 %v1964_v62  ;;  %v2044_v62 = vld [vmem:[%s2847_s3 + $0x1f4] ss:$8 sps:$4 sm:$0xff]  }
  0x48   : > { %1466 = vmatprep.subr.bf16.mxu1 %v1972_v63  ;;  %v2029_v63 = vld [vmem:[%s2847_s3 + $0xa4] ss:$8 sps:$4 sm:$0xff]  }
  0x49   : > { %783 = vmatpush1.bf16.msra.mxu0 %v1928_v0  ;;  %v2042_v0 = vld [vmem:[%s2847_s3 + $0x1f0] ss:$8 sps:$4 sm:$0xff]  }
  0x4a   : > { %784 = vmatprep.subr.bf16.mxu0 %v1933_v1  ;;  %v2027_v1 = vld [vmem:[%s2847_s3 + $0xa0] ss:$8 sps:$4 sm:$0xff]  }
  0x4b   : > { %1467 = vmatpush1.bf16.msra.mxu1 %v1970_v2  ;;  %v2050_v2 = vld [vmem:[%s2847_s3 + $0x204] ss:$8 sps:$4 sm:$0xff]  }
  0x4c   : > { %1468 = vmatprep.subr.bf16.mxu1 %v1978_v3  ;;  %v2035_v3 = vld [vmem:[%s2847_s3 + $0xb4] ss:$8 sps:$4 sm:$0xff]  }
  0x4d   : > { %785 = vmatpush1.bf16.msra.mxu0 %v1931_v4  ;;  %v2033_v4 = vld [vmem:[%s2847_s3 + $0xb0] ss:$8 sps:$4 sm:$0xff]  }
  0x4e   : > { %786 = vmatprep.subr.bf16.mxu0 %v1936_v5  ;;  %v2041_v5 = vld [vmem:[%s2847_s3 + $0xc4] ss:$8 sps:$4 sm:$0xff]  }
  0x4f   : > { %1469 = vmatpush1.bf16.msra.mxu1 %v1976_v6  ;;  %v2039_v6 = vld [vmem:[%s2847_s3 + $0xc0] ss:$8 sps:$4 sm:$0xff]  }
  0x50   : > { %1470 = vmatprep.subr.bf16.mxu1 %v1984_v7  ;;  %v2047_v7 = vld [vmem:[%s2847_s3 + $0xd4] ss:$8 sps:$4 sm:$0xff]  }
  0x51   : > { %787 = vmatpush1.bf16.msra.mxu0 %v1934_v8  ;;  %v2045_v8 = vld [vmem:[%s2847_s3 + $0xd0] ss:$8 sps:$4 sm:$0xff]  }
  0x52   : > { %788 = vmatprep.subr.bf16.mxu0 %v1939_v9  ;;  %v2053_v9 = vld [vmem:[%s2847_s3 + $0xe4] ss:$8 sps:$4 sm:$0xff]  }
  0x53   : > { %1471 = vmatpush1.bf16.msra.mxu1 %v1982_v10  ;;  %v2051_v10 = vld [vmem:[%s2847_s3 + $0xe0] ss:$8 sps:$4 sm:$0xff]  }
  0x54   : > { %1472 = vmatprep.subr.bf16.mxu1 %v1990_v11  ;;  %v2059_v11 = vld [vmem:[%s2847_s3 + $0xf4] ss:$8 sps:$4 sm:$0xff]  }
  0x55   : > { %789 = vmatpush1.bf16.msra.mxu0 %v1937_v12  ;;  %v2057_v12 = vld [vmem:[%s2847_s3 + $0xf0] ss:$8 sps:$4 sm:$0xff]  }
  0x56   : > { %790 = vmatprep.subr.bf16.mxu0 %v1942_v13  ;;  %v302_v13 = vlaneseq }
  0x57   : > { %1473 = vmatpush1.bf16.msra.mxu1 %v1988_v14 }
  0x58   : > { %1474 = vmatprep.subr.bf16.mxu1 %v1996_v15  ;;  %v2673_v14 = vshrl.u32 %v302_v13, 7 }
  0x59   : > { %791 = vmatpush1.bf16.msra.mxu0 %v1940_v16  ;;  %v2679_v16 = vld [vmem:[%s2846_s2] sm:$0x3f] }
  0x5a   : > { %792 = vmatprep.subr.bf16.mxu0 %v1945_v17  ;;  %v312_v15 = vsub.s32 2, %v2673_v14  ;;  %v316_v17 = vsub.s32 3, %v2673_v14 }
  0x5b   : > { %1475 = vmatpush1.bf16.msra.mxu1 %v1994_v18 }
  0x5c   : > { %1476 = vmatprep.subr.bf16.mxu1 %v2002_v19  ;;  %v313_v18 = vrot.slane %v2679_v16, %v312_v15  ;;  %v304_v19 = vsub.s32 0, %v2673_v14 }
  0x5d   : > { %793 = vmatpush1.bf16.msra.mxu0 %v1943_v20  ;;  %v317_v20 = vrot.slane %v2679_v16, %v316_v17  ;;  %v2093_v17 = vld [vmem:[%s2847_s3 + $0x2d0] ss:$8 sps:$4 sm:$0xff]  }
  0x5e   : > { %794 = vmatprep.subr.bf16.mxu0 %v1948_v21  ;;  %v308_v21 = vsub.s32 1, %v2673_v14 }
  0x5f   : > { %1477 = vmatpush1.bf16.msra.mxu1 %v2000_v22 }
  0x60   : > { %1478 = vmatprep.subr.bf16.mxu1 %v2008_v24 }
  0x61   : > { %795 = vmatpush1.bf16.msra.mxu0 %v1946_v23 }
  0x62   : > { %796 = vmatprep.subr.bf16.mxu0 %v1951_v25  ;;  %v305_v25 = vrot.slane %v2679_v16, %v304_v19 }
  0x63   : > { %1479 = vmatpush1.bf16.msra.mxu1 %v2006_v26 }
  0x64   : > { %1480 = vmatprep.subr.bf16.mxu1 %v2014_v27 }
  0x65   : > { %797 = vmatpush1.bf16.msra.mxu0 %v1949_v28  ;;  %v309_v28 = vrot.slane %v2679_v16, %v308_v21 }
  0x66   : > { %798 = vmatprep.subr.bf16.mxu0 %v1954_v29 }
  0x67   : > { %1481 = vmatpush1.bf16.msra.mxu1 %v2012_v30 }
  0x68   : > { %1482 = vmatprep.subr.bf16.mxu1 %v2020_v31 }
  0x69   : > { %799 = vmatpush1.bf16.msra.mxu0 %v1952_v32 }
  0x6a   : > { %800 = vmatprep.subr.bf16.mxu0 %v1957_v33 }
  0x6b   : > { %1483 = vmatpush1.bf16.msra.mxu1 %v2018_v34 }
  0x6c   : > { %1484 = vmatprep.subr.bf16.mxu1 %v2026_v35 }
  0x6d   : > { %801 = vmatpush1.bf16.msra.mxu0 %v1955_v36  ;;  %v2048_v36 = vld [vmem:[%s2847_s3 + $0x200] ss:$8 sps:$4 sm:$0xff]  }
  0x6e   : > { %1419 = vmatprep.subr.bf16.mxu0 %v1969_v37 }
  0x6f   : > { %1485 = vmatpush1.bf16.msra.mxu1 %v2024_v38 }
  0x70   : > { %1486 = vmatprep.subr.bf16.mxu1 %v2032_v39  ;;  %811 = vmatmul.mubr.bf16.vlgmr.msra.gmra.mrb[4].mxu0 %v2397_v50  ;;  %v1999_v50 = vld [vmem:[%s2847_s3 + $0x54] ss:$8 sps:$4 sm:$0xff]  }
  0x71   : > { %1420 = vmatpush1.bf16.msra.mxu0 %v1967_v40 }
  0x72   : > { %1421 = vmatprep.subr.bf16.mxu0 %v1975_v41  ;;  %v2056_v41 = vld [vmem:[%s2847_s3 + $0x214] ss:$8 sps:$4 sm:$0xff]  }
  0x73   : > { %1487 = vmatpush1.bf16.msra.mxu1 %v2030_v42 }
  0x74   : > { %1488 = vmatprep.subr.bf16.mxu1 %v2038_v58  ;;  %v2075_v58 = vld [vmem:[%s2847_s3 + $0x270] ss:$8 sps:$4 sm:$0xff]  }
  0x75   : > { %1422 = vmatpush1.bf16.msra.mxu0 %v1973_v43 }
  0x76   : > { %1423 = vmatprep.subr.bf16.mxu0 %v1981_v44 }
  0x77   : > { %1489 = vmatpush1.bf16.msra.mxu1 %v2036_v60  ;;  %v2078_v60 = vld [vmem:[%s2847_s3 + $0x280] ss:$8 sps:$4 sm:$0xff]  }
  0x78   : > { %1490 = vmatprep.subr.bf16.mxu1 %v2044_v62  ;;  %v2081_v62 = vld [vmem:[%s2847_s3 + $0x290] ss:$8 sps:$4 sm:$0xff]  }
  0x79   : > { %1424 = vmatpush1.bf16.msra.mxu0 %v1979_v45 }
  0x7a   : > { %1425 = vmatprep.subr.bf16.mxu0 %v1987_v46  ;;  %v2054_v46 = vld [vmem:[%s2847_s3 + $0x210] ss:$8 sps:$4 sm:$0xff]  }
  0x7b   : > { %1491 = vmatpush1.bf16.msra.mxu1 %v2042_v0  ;;  %v2084_v0 = vld [vmem:[%s2847_s3 + $0x2a0] ss:$8 sps:$4 sm:$0xff]  }
  0x7c   : > { %1501 = vmatprep.subr.bf16.mxu1 %v2050_v2  ;;  %v2089_v2 = vld [vmem:[%s2847_s3 + $0x2b4] ss:$8 sps:$4 sm:$0xff]  }
  0x7d   : > { %1426 = vmatpush1.bf16.msra.mxu0 %v1985_v47  ;;  %v2062_v47 = vld [vmem:[%s2847_s3 + $0x224] ss:$8 sps:$4 sm:$0xff]  }
  0x7e   : > { %1427 = vmatprep.subr.bf16.mxu0 %v1993_v48  ;;  %v2060_v48 = vld [vmem:[%s2847_s3 + $0x220] ss:$8 sps:$4 sm:$0xff]  }
  0x81   : > { %1428 = vmatpush1.bf16.msra.mxu0 %v1991_v49  ;;  %v2065_v49 = vld [vmem:[%s2847_s3 + $0x234] ss:$8 sps:$4 sm:$0xff]  }
  0x82   : > { %1429 = vmatprep.subr.bf16.mxu0 %v1999_v50  ;;  %v2063_v50 = vld [vmem:[%s2847_s3 + $0x230] ss:$8 sps:$4 sm:$0xff]  }
  0x85   : > { %1430 = vmatpush1.bf16.msra.mxu0 %v1997_v51  ;;  %v2068_v51 = vld [vmem:[%s2847_s3 + $0x244] ss:$8 sps:$4 sm:$0xff]  }
  0x86   : > { %1431 = vmatprep.subr.bf16.mxu0 %v2005_v52  ;;  %v2066_v52 = vld [vmem:[%s2847_s3 + $0x240] ss:$8 sps:$4 sm:$0xff]  }
  0x89   : > { %1432 = vmatpush1.bf16.msra.mxu0 %v2003_v53  ;;  %v2071_v53 = vld [vmem:[%s2847_s3 + $0x254] ss:$8 sps:$4 sm:$0xff]  }
  0x8a   : > { %1433 = vmatprep.subr.bf16.mxu0 %v2011_v54  ;;  %v2069_v54 = vld [vmem:[%s2847_s3 + $0x250] ss:$8 sps:$4 sm:$0xff]  }
  0x8d   : > { %1434 = vmatpush1.bf16.msra.mxu0 %v2009_v55  ;;  %v2074_v55 = vld [vmem:[%s2847_s3 + $0x264] ss:$8 sps:$4 sm:$0xff]  }
  0x8e   : > { %1435 = vmatprep.subr.bf16.mxu0 %v2017_v56  ;;  %v2072_v56 = vld [vmem:[%s2847_s3 + $0x260] ss:$8 sps:$4 sm:$0xff]  }
  0x91   : > { %1436 = vmatpush1.bf16.msra.mxu0 %v2015_v57  ;;  %v2077_v57 = vld [vmem:[%s2847_s3 + $0x274] ss:$8 sps:$4 sm:$0xff]  }
  0x92   : > { %1437 = vmatprep.subr.bf16.mxu0 %v2023_v59  ;;  %v2080_v59 = vld [vmem:[%s2847_s3 + $0x284] ss:$8 sps:$4 sm:$0xff]  }
  0x95   : > { %1438 = vmatpush1.bf16.msra.mxu0 %v2021_v61  ;;  %v2083_v61 = vld [vmem:[%s2847_s3 + $0x294] ss:$8 sps:$4 sm:$0xff]  }
  0x96   : > { %1439 = vmatprep.subr.bf16.mxu0 %v2029_v63  ;;  %v2086_v63 = vld [vmem:[%s2847_s3 + $0x2a4] ss:$8 sps:$4 sm:$0xff]  }
  0x99   : > { %1440 = vmatpush1.bf16.msra.mxu0 %v2027_v1  ;;  %v324_v1 = vsub.s32 5, %v2673_v14 }
  0x9a   : > { %1441 = vmatprep.subr.bf16.mxu0 %v2035_v3  ;;  %v2087_v3 = vld [vmem:[%s2847_s3 + $0x2b0] ss:$8 sps:$4 sm:$0xff]  }
  0x9d   : > { %1442 = vmatpush1.bf16.msra.mxu0 %v2033_v4  ;;  %v325_v4 = vrot.slane %v2679_v16, %v324_v1 }
  0x9e   : > { %1443 = vmatprep.subr.bf16.mxu0 %v2041_v5  ;;  %v2092_v5 = vld [vmem:[%s2847_s3 + $0x2c4] ss:$8 sps:$4 sm:$0xff]  }
  0xa1   : > { %1444 = vmatpush1.bf16.msra.mxu0 %v2039_v6 }
  0xa2   : > { %1445 = vmatprep.subr.bf16.mxu0 %v2047_v7 }
  0xa5   : > { %1446 = vmatpush1.bf16.msra.mxu0 %v2045_v8  ;;  %v2090_v8 = vld [vmem:[%s2847_s3 + $0x2c0] ss:$8 sps:$4 sm:$0xff]  }
  0xa6   : > { %1447 = vmatprep.subr.bf16.mxu0 %v2053_v9 }
  0xa9   : > { %1448 = vmatpush1.bf16.msra.mxu0 %v2051_v10 }
  0xaa   : > { %1449 = vmatprep.subr.bf16.mxu0 %v2059_v11  ;;  %v320_v11 = vsub.s32 4, %v2673_v14 }
  0xad   : > { %1450 = vmatpush1.bf16.msra.mxu0 %v2057_v12  ;;  %v2095_v12 = vld [vmem:[%s2847_s3 + $0x2d4] ss:$8 sps:$4 sm:$0xff]  }
 0x111   : > { %v771_v22 = vpop.f32.mrb[0].mxu1 }
 0x112   : > { %v772_v23 = vadd.f32 %v771_v22, %v313_v18  ;;  %v773_v24 = vpop.f32.mrb[1].mxu1  ;;  %v2098_v22 = vld [vmem:[%s2847_s3 + $0x2e4] ss:$8 sps:$4 sm:$0xff]  }
 0x113   : > { %v774_v26 = vadd.f32 %v773_v24, %v317_v20  ;;  %v775_v27 = vpop.f32.mrb[2].mxu1  ;;  %v730_v32 = vpop.f32.mrb[0].mxu0  ;;  %v321_v20 = vrot.slane %v2679_v16, %v320_v11  ;;  %v2099_v16 = vld [vmem:[%s2847_s3 + $0x2f0] ss:$8 sps:$4 sm:$0xff]  }
 0x114   : > { %v821_v29 = vmax.f32 %v772_v23, 0.0  ;;  %v776_v30 = vpop.f32.mrb[3].mxu1  ;;  %v731_v33 = vadd.f32 %v730_v32, %v305_v25  ;;  %v732_v34 = vpop.f32.mrb[1].mxu0  ;;  %v2096_v23 = vld [vmem:[%s2847_s3 + $0x2e0] ss:$8 sps:$4 sm:$0xff]  }
 0x115   : > { %v822_v31 = vmax.f32 %v774_v26, 0.0  ;;  %v733_v37 = vadd.f32 %v732_v34, %v309_v28  ;;  %v734_v38 = vpop.f32.mrb[2].mxu0  ;;  %v2101_v25 = vld [vmem:[%s2847_s3 + $0x2f4] ss:$8 sps:$4 sm:$0xff]   ;;  %v927_v28 = vld [vmem:[%s2848_s4] sm:$0x3] }
 0x116   : > { %v827_v39 = vpack.c.bf16 %v821_v29, %v821_v29  ;;  %v819_v40 = vmax.f32 %v731_v33, 0.0  ;;  %v735_v42 = vpop.f32.mrb[3].mxu0  ;;  %v932_v29 = vrot.slane %v927_v28, %v304_v19 }
 0x117   : > { %v828_v35 = vpack.c.bf16 %v822_v31, %v822_v31  ;;  %v820_v43 = vmax.f32 %v733_v37, 0.0 }
 0x118   : > { %v825_v44 = vpack.c.bf16 %v819_v40, %v819_v40 }
 0x119   : > { %1492 = vmatprep.mubr.bf16.mxu1 %v828_v35  ;;  %v826_v45 = vpack.c.bf16 %v820_v43, %v820_v43  ;;  %v936_v35 = vrot.slane %v927_v28, %v308_v21 }
 0x11a   : > { %1493 = vmatmul.mubr.bf16.vlgmr.msra.gmra.mrb[4].mxu1 %v827_v39 }
 0x11b   : > { %1502 = vmatpush1.bf16.msra.mxu1 %v2048_v36  ;;  %1451 = vmatprep.mubr.bf16.mxu0 %v826_v45 }
 0x11c   : > { %1503 = vmatprep.subr.bf16.mxu1 %v2056_v41  ;;  %1452 = vmatmul.mubr.bf16.vlgmr.msra.gmra.mrb[8].mxu0 %v825_v44 }
 0x11f   : > { %1504 = vmatpush1.bf16.msra.mxu1 %v2054_v46 }
 0x120   : > { %1505 = vmatprep.subr.bf16.mxu1 %v2062_v47 }
 0x123   : > { %1506 = vmatpush1.bf16.msra.mxu1 %v2060_v48 }
 0x124   : > { %1507 = vmatprep.subr.bf16.mxu1 %v2065_v49 }
 0x127   : > { %1508 = vmatpush1.bf16.msra.mxu1 %v2063_v50 }
 0x128   : > { %1509 = vmatprep.subr.bf16.mxu1 %v2068_v51 }
 0x12b   : > { %1510 = vmatpush1.bf16.msra.mxu1 %v2066_v52 }
 0x12c   : > { %1511 = vmatprep.subr.bf16.mxu1 %v2071_v53 }
 0x12f   : > { %1512 = vmatpush1.bf16.msra.mxu1 %v2069_v54 }
 0x130   : > { %1513 = vmatprep.subr.bf16.mxu1 %v2074_v55 }
 0x133   : > { %1514 = vmatpush1.bf16.msra.mxu1 %v2072_v56 }
 0x134   : > { %1515 = vmatprep.subr.bf16.mxu1 %v2077_v57 }
 0x137   : > { %1516 = vmatpush1.bf16.msra.mxu1 %v2075_v58 }
 0x138   : > { %1517 = vmatprep.subr.bf16.mxu1 %v2080_v59 }
 0x13b   : > { %1518 = vmatpush1.bf16.msra.mxu1 %v2078_v60 }
 0x13c   : > { %1519 = vmatprep.subr.bf16.mxu1 %v2083_v61 }
 0x13f   : > { %1520 = vmatpush1.bf16.msra.mxu1 %v2081_v62 }
 0x140   : > { %1521 = vmatprep.subr.bf16.mxu1 %v2086_v63 }
 0x143   : > { %1522 = vmatpush1.bf16.msra.mxu1 %v2084_v0  ;;  %v812_v6 = vpop.f32.mrb[4].mxu0 }
 0x144   : > { %1523 = vmatprep.subr.bf16.mxu1 %v2089_v2  ;;  %v814_v7 = vpop.f32.mrb[5].mxu0  ;;  %v813_v24 = vadd.f32 %v812_v6, %v321_v20 }
 0x145   : > { %v815_v9 = vadd.f32 %v814_v7, %v325_v4  ;;  %v816_v10 = vpop.f32.mrb[6].mxu0 }
 0x146   : > { %v817_v13 = vpop.f32.mrb[7].mxu0  ;;  %v823_v26 = vmax.f32 %v813_v24, 0.0 }
 0x147   : > { %1524 = vmatpush1.bf16.msra.mxu1 %v2087_v3  ;;  %v824_v15 = vmax.f32 %v815_v9, 0.0 }
 0x148   : > { %1525 = vmatprep.subr.bf16.mxu1 %v2092_v5  ;;  %v829_v27 = vpack.c.bf16 %v823_v26, %v823_v26 }
 0x149   : > { %v830_v18 = vpack.c.bf16 %v824_v15, %v824_v15 }
 0x14b   : > { %1526 = vmatpush1.bf16.msra.mxu1 %v2090_v8  ;;  %1533 = vmatprep.mubr.bf16.mxu1 %v830_v18 }
 0x14c   : > { %1527 = vmatprep.subr.bf16.mxu1 %v2095_v12 }
 0x14f   : > { %1528 = vmatpush1.bf16.msra.mxu1 %v2093_v17 }
 0x150   : > { %1529 = vmatprep.subr.bf16.mxu1 %v2098_v22 }
 0x153   : > { %1530 = vmatpush1.bf16.msra.mxu1 %v2096_v23 }
 0x154   : > { %1531 = vmatprep.subr.bf16.mxu1 %v2101_v25 }
 0x157   : > { %1532 = vmatpush1.bf16.msra.mxu1 %v2099_v16 }
 0x15a   : > { %1534 = vmatmul.mubr.bf16.vlgmr.msra.gmra.mrb[4].mxu1 %v829_v27 }
 0x1ef   : > { %v1453_v30 = vpop.f32.mrb[8].mxu0 }
 0x1f0   : > { %v1454_v31 = vadd.f32 %v1453_v30, %v932_v29  ;;  %v1455_v32 = vpop.f32.mrb[9].mxu0 }
 0x1f1   : > { %v1457_v33 = vpop.f32.mrb[10].mxu0  ;;  %v1456_v36 = vadd.f32 %v1455_v32, %v936_v35 }
 0x1f2   : > { %v1458_v34 = vpop.f32.mrb[11].mxu0 }
 0x22d   : > { %v1535_v37 = vpop.f32.mrb[4].mxu1 }
 0x22e   : > { %v1804_v38 = vadd.f32 %v1535_v37, %v1454_v31  ;;  %v1537_v39 = vpop.f32.mrb[5].mxu1 }
 0x22f   : > { %v1806_v40 = vadd.f32 %v1537_v39, %v1456_v36  ;;  %v1539_v19 = vpop.f32.mrb[6].mxu1 }
 0x230   : > { %1542 = vst [vmem:[%s217_s23] sm:$0xff] %v1804_v38  ;;  %v1540_v14 = vpop.f32.mrb[7].mxu1 }
 0x231   : > { %1543 = vst.msk [vmem:[%s217_s23 + $0x8] sm:$0xff] %vm692_vm0, %v1806_v40 }
 0x232   : > { %2115 = shalt.err (!%p2112_p3)
}
 0x233   : > { %s2116_s26 = scalar_lea.hbm %s2801_s7, 256  ;;  %s2120_s14 = scalar_lea.hbm %s2849_s5, 512 }
 0x234   : > { %p2117_p4 = scmp.ne.s32.totalorder %s2801_s7, %s2116_s26  ;;  %p2121_p9 = scmp.lt.u32.totalorder %s2801_s7, %s2849_s5 }
 0x235   : > { %p2122_p10 = scmp.lt.u32.totalorder %s2120_s14, %s2116_s26  ;;  %p2124_p12 = scmp.lt.u32.totalorder %s2116_s26, %s2801_s7 }
 0x236   : > { %p2118_p7 = pnand %p2117_p4, %p2235_p5 }
 0x237   : > { %p2123_p11 = por %p2122_p10, %p2121_p9 }
 0x238   : > { %p2119_p8 = pneg %p2118_p7 }
 0x239   : > { %p2125_p13 = por %p2124_p12, %p2123_p11 }
 0x23b   : > { %p2126_p0 = pnand %p2125_p13, %p2119_p8 }
 0x23d   : > { %2129 = shalt.err (!%p2126_p0)
}
 0x23e   : > { %1811 = dma.vmem_to_hbm [thread:$0]  (%p2235_p5), %s2803_s30, 256, %s2801_s7, %s1545_s22  }
 0x23f PF: > { %p1817_p1 = scmp.ge.s32.totalorder %s2164_s21, 2  ;;  %s1571_s17 = sand.u32 1, %s2152_s18  }
 0x240   : > { %s1572_s23 = scalar_lea.sflag [#allocation3], %s1571_s17 }
 0x241   : > { %p1814_p2 = pnand %p1817_p1, %p2239_p6 }
 0x243   : > { %2147 = dma.done.wait (!%p1814_p2), %s1572_s23, 256  }
 0x244   : > { %2149 = vsyncadd (!%p1814_p2), %s1572_s23, 4294967040  ;;  %p15_p3 = scmp.ge.s32.totalorder %s2222_s24, 4   ;;  %s2852_s18 = smov %s2156_s19 }
 0x245   : > { %s2853_s19 = smov %s2160_s20  ;;  %s2854_s20 = smov %s2233_s27 }
 0x246   : > { %s2855_s21 = smov %s2222_s24  ;;  %17 = sbr.rel (!%p15_p3) target bundleno = 3 (0x3), region = 75 }
 0x24d   :  { %1577 = vsyncpa [#allocation3], 1 }
 0x24e   :  { %1579 = vsyncpa [#allocation3 + $0x1], 1 }

</bundles_post_ra>
